<compile_context>
chip_gen: v7x
topology: tpu7x:2x2x1
jax: 0.10.0
libtpu: 0.0.40
codegen_flags: <defaults>
</compile_context>

<pallas_src>
import jax
import jax.numpy as jnp
from jax.experimental import pallas as pl
from jax.experimental.pallas import tpu as pltpu


# ---------------------------------------------------------------------------
# Pallas kernel: one whole DecoderBlock (upsample + concat + pad + conv/BN/ReLU x2)
# for a single batch element.
# ---------------------------------------------------------------------------
def _decoder_block_kernel(x_ref, skip_ref, w1_ref, b1_ref, w2_ref, b2_ref,
                          o_ref, u_pad, y_pad):
    # x_ref   : (1, h, w, Cx)     un-upsampled carry tensor (h=H/2, w=W/2)
    # skip_ref: (1, H, W, Cs)     skip connection
    # w1_ref  : (3, 3*C1, Co)     conv1 taps, kw folded into K (BN scale folded in)
    # w2_ref  : (3, 3*Co, Co)     conv2 taps (BN scale folded in)
    # b*_ref  : (1, Co)           fused BN bias
    # o_ref   : (1, H*W, Co)      output (reshaped to NHWC in the wrapper)
    # u_pad   : VMEM (H+2, W+2, C1)  zero-padded concat input of conv1
    # y_pad   : VMEM (H+2, W+2, Co)  zero-padded conv1 output (VMEM-resident)
    h, w, Cx = x_ref.shape[1], x_ref.shape[2], x_ref.shape[3]
    H, W, Cs = skip_ref.shape[1], skip_ref.shape[2], skip_ref.shape[3]
    C1 = Cx + Cs
    Co = o_ref.shape[2]
    HW = H * W
    f32 = jnp.float32

    # ---- zero only the 1-pixel halo border (interior is fully rewritten) ----
    u_pad[0:1, :, :] = jnp.zeros((1, W + 2, C1), f32)
    u_pad[H + 1:H + 2, :, :] = jnp.zeros((1, W + 2, C1), f32)
    u_pad[:, 0:1, :] = jnp.zeros((H + 2, 1, C1), f32)
    u_pad[:, W + 1:W + 2, :] = jnp.zeros((H + 2, 1, C1), f32)
    y_pad[0:1, :, :] = jnp.zeros((1, W + 2, Co), f32)
    y_pad[H + 1:H + 2, :, :] = jnp.zeros((1, W + 2, Co), f32)
    y_pad[:, 0:1, :] = jnp.zeros((H + 2, 1, Co), f32)
    y_pad[:, W + 1:W + 2, :] = jnp.zeros((H + 2, 1, Co), f32)

    # ---- fused 2x nearest upsample of the carry + channel concat with skip ----
    x = x_ref[0]                                                  # (h, w, Cx)
    # height 2x: leading-dim broadcast + leading-dims merge (layout-trivial)
    x = jnp.broadcast_to(x[:, None, :, :], (h, 2, w, Cx)).reshape(H, w, Cx)
    # width 2x: each source column written into two interior columns
    for j in range(w):
        col = x[:, j:j + 1, :]                                    # (H, 1, Cx)
        u_pad[1:H + 1, 2 * j + 1:2 * j + 2, 0:Cx] = col
        u_pad[1:H + 1, 2 * j + 2:2 * j + 3, 0:Cx] = col
    u_pad[1:H + 1, 1:W + 1, Cx:C1] = skip_ref[0]

    # ---- conv1 (3x3, pad=1, no bias) + BN(+fold) + ReLU : 3 matmuls, K=3*C1 ----
    acc1 = jnp.zeros((HW, Co), f32)
    for kh in range(3):
        patch = jnp.concatenate(
            [u_pad[kh:kh + H, kw:kw + W, :] for kw in range(3)],
            axis=-1).reshape(HW, 3 * C1)
        acc1 = acc1 + jnp.dot(patch, w1_ref[kh], preferred_element_type=f32)
    y1 = jnp.maximum(acc1 + b1_ref[...], 0.0)                     # (HW, Co)

    # keep the conv1 result (with halo) in VMEM -- no HBM round trip
    y_pad[1:H + 1, 1:W + 1, :] = y1.reshape(H, W, Co)

    # ---- conv2 (3x3, pad=1, no bias) + BN(+fold) + ReLU : 3 matmuls, K=3*Co ----
    acc2 = jnp.zeros((HW, Co), f32)
    for kh in range(3):
        patch = jnp.concatenate(
            [y_pad[kh:kh + H, kw:kw + W, :] for kw in range(3)],
            axis=-1).reshape(HW, 3 * Co)
        acc2 = acc2 + jnp.dot(patch, w2_ref[kh], preferred_element_type=f32)
    y2 = jnp.maximum(acc2 + b2_ref[...], 0.0)                     # (HW, Co)

    o_ref[0] = y2.astype(o_ref.dtype)


def decoder_block_forward(p, x, skip):
    """One DecoderBlock: x (N,h,w,Cx), skip (N,2h,2w,Cs) -> (N,2h,2w,Co)."""
    N, h, w, Cx = x.shape
    _, H, W, Cs = skip.shape
    assert H == 2 * h and W == 2 * w
    C1 = Cx + Cs
    Co = p["w1"].shape[-1]

    # Fold BN scale into the conv weights (conv is linear, scale is per-out-ch);
    # keep only the additive bias for the in-kernel epilogue.
    w1 = (p["w1"] * p["scale1"]).reshape(3, 3 * C1, Co).astype(jnp.float32)
    w2 = (p["w2"] * p["scale2"]).reshape(3, 3 * Co, Co).astype(jnp.float32)
    b1 = p["bias1"].reshape(1, Co).astype(jnp.float32)
    b2 = p["bias2"].reshape(1, Co).astype(jnp.float32)

    # Explicit VMEM budget: scratch + double-buffered input/output blocks
    # + headroom for the concat patches / accumulators.
    fbytes = 4
    scratch_b = (H + 2) * (W + 2) * (C1 + Co) * fbytes
    io_b = 2 * (h * w * Cx + H * W * Cs + H * W * Co
                + 9 * C1 * Co + 9 * Co * Co + 2 * Co) * fbytes
    tmp_b = H * W * (3 * C1 + 3 * Co + 2 * Co) * fbytes
    vmem_limit = int(min(64 * 1024 * 1024,
                         max(2 * (scratch_b + io_b + tmp_b),
                             16 * 1024 * 1024)))

    grid_spec = pltpu.PrefetchScalarGridSpec(
        num_scalar_prefetch=0,
        grid=(N,),
        in_specs=[
            pl.BlockSpec((1, h, w, Cx), lambda n: (n, 0, 0, 0)),   # carry x
            pl.BlockSpec((1, H, W, Cs), lambda n: (n, 0, 0, 0)),   # skip
            pl.BlockSpec((3, 3 * C1, Co), lambda n: (0, 0, 0)),    # w1 (folded)
            pl.BlockSpec((1, Co), lambda n: (0, 0)),               # bias1
            pl.BlockSpec((3, 3 * Co, Co), lambda n: (0, 0, 0)),    # w2 (folded)
            pl.BlockSpec((1, Co), lambda n: (0, 0)),               # bias2
        ],
        out_specs=pl.BlockSpec((1, H * W, Co), lambda n: (n, 0, 0)),
        scratch_shapes=[
            pltpu.VMEM((H + 2, W + 2, C1), jnp.float32),           # u_pad
            pltpu.VMEM((H + 2, W + 2, Co), jnp.float32),           # y_pad
        ],
    )
    out = pl.pallas_call(
        _decoder_block_kernel,
        out_shape=jax.ShapeDtypeStruct((N, H * W, Co), jnp.float32),
        grid_spec=grid_spec,
        compiler_params=pltpu.CompilerParams(
            dimension_semantics=("parallel",),
            vmem_limit_bytes=vmem_limit),
    )(x, skip, w1, b1, w2, b2)
    return out.reshape(N, H, W, Co)


def smp_unet_decoder_forward(params, feature, skips):
    d = feature                                                    # center = Identity
    decode = []
    for p, s in zip(params, skips):
        d = decoder_block_forward(p, d, s)
        decode.append(d)
    last = d
    return last, decode


# ---------------------------------------------------------------------------
# Deterministic parameter construction (synthetic; shapes from __init__)
# ---------------------------------------------------------------------------
def _fused_bn(key, c, eps=1e-5):
    k1, k2, k3, k4 = jax.random.split(key, 4)
    gamma = 0.5 + jax.random.uniform(k1, (c,), jnp.float32)
    beta = 0.1 * jax.random.normal(k2, (c,), jnp.float32)
    mean = 0.1 * jax.random.normal(k3, (c,), jnp.float32)
    var = 0.5 + jax.random.uniform(k4, (c,), jnp.float32)
    scale = gamma / jnp.sqrt(var + eps)
    bias = beta - mean * scale
    return scale, bias


def make_decoder_params(key, in_channel, skip_channel, out_channel):
    i_channel = [in_channel] + list(out_channel[:-1])
    params = []
    for i, s, o in zip(i_channel, skip_channel, out_channel):
        key, k1, k2, k3, k4 = jax.random.split(key, 5)
        w1 = 0.1 * jax.random.normal(k1, (3, 3, i + s, o), jnp.float32)
        w2 = 0.1 * jax.random.normal(k2, (3, 3, o, o), jnp.float32)
        s1, b1 = _fused_bn(k3, o)
        s2, b2 = _fused_bn(k4, o)
        params.append(dict(w1=w1, scale1=s1, bias1=b1,
                           w2=w2, scale2=s2, bias2=b2))
    return params


# ---------------------------------------------------------------------------
# Pure-JAX reference (for correctness check of the Pallas kernels)
# ---------------------------------------------------------------------------
def _ref_conv_bn_relu(x, w, scale, bias):
    y = jax.lax.conv_general_dilated(
        x, w, window_strides=(1, 1), padding="SAME",
        dimension_numbers=("NHWC", "HWIO", "NHWC"))
    return jnp.maximum(y * scale + bias, 0.0)


def _ref_decoder(params, feature, skips):
    d = feature
    decode = []
    for p, s in zip(params, skips):
        d = jnp.repeat(jnp.repeat(d, 2, axis=1), 2, axis=2)
        d = jnp.concatenate([d, s], axis=-1)
        d = _ref_conv_bn_relu(d, p["w1"], p["scale1"], p["bias1"])
        d = _ref_conv_bn_relu(d, p["w2"], p["scale2"], p["bias2"])
        decode.append(d)
    return d, decode


# ---------------------------------------------------------------------------
if __name__ == "__main__":
    key = jax.random.PRNGKey(0)

    # Small decoder config: 2 blocks.
    in_channel = 16
    skip_channel = [8, 4]
    out_channel = [8, 8]

    kf, ks0, ks1, kp = jax.random.split(key, 4)
    # Bottleneck feature 4x4, skips at 8x8 and 16x16 (NHWC).
    feature = jax.random.normal(kf, (2, 4, 4, in_channel), jnp.float32)
    skips = [
        jax.random.normal(ks0, (2, 8, 8, skip_channel[0]), jnp.float32),
        jax.random.normal(ks1, (2, 16, 16, skip_channel[1]), jnp.float32),
    ]
    params = make_decoder_params(kp, in_channel, skip_channel, out_channel)

    last, decode = smp_unet_decoder_forward(params, feature, skips)
    last = jax.block_until_ready(last)
    decode = [jax.block_until_ready(d) for d in decode]

    # Validate against pure-JAX reference.
    ref_last, ref_decode = _ref_decoder(params, feature, skips)
    assert last.shape == (2, 16, 16, out_channel[-1])
    assert all(d.shape == r.shape for d, r in zip(decode, ref_decode))
    import numpy as np
    np.testing.assert_allclose(np.asarray(last), np.asarray(ref_last),
                               rtol=1e-3, atol=1e-3)
    for d, r in zip(decode, ref_decode):
        np.testing.assert_allclose(np.asarray(d), np.asarray(r),
                                   rtol=1e-3, atol=1e-3)

    print("KERNEL_OK")
</pallas_src>

<mosaic_0001>
module attributes {stable_mosaic.version = 11 : i64} {
  func.func @_decoder_block_kernel(%arg0: i32, %arg1: memref<1x4x4x16xf32, #tpu.memory_space<vmem>>, %arg2: memref<1x8x8x8xf32, #tpu.memory_space<vmem>>, %arg3: memref<3x72x8xf32, #tpu.memory_space<vmem>>, %arg4: memref<1x8xf32, #tpu.memory_space<vmem>>, %arg5: memref<3x24x8xf32, #tpu.memory_space<vmem>>, %arg6: memref<1x8xf32, #tpu.memory_space<vmem>>, %arg7: memref<1x64x8xf32, #tpu.memory_space<vmem>>, %arg8: memref<10x10x24xf32, #tpu.memory_space<vmem>>, %arg9: memref<10x10x8xf32, #tpu.memory_space<vmem>>) attributes {dimension_semantics = [#tpu.dimension_semantics<parallel>], iteration_bounds = array<i64: 2>, scalar_prefetch = 0 : i64, scratch_operands = 2 : i64, tpu.core_type = #tpu.core_type<tc>, window_params = [{transform_indices = @transform_0, window_bounds = array<i64: 1, 4, 4, 16>}, {transform_indices = @transform_1, window_bounds = array<i64: 1, 8, 8, 8>}, {pipeline_mode = #tpu.pipeline_mode<synchronous>, transform_indices = @transform_2, window_bounds = array<i64: 3, 72, 8>}, {pipeline_mode = #tpu.pipeline_mode<synchronous>, transform_indices = @transform_3, window_bounds = array<i64: 1, 8>}, {pipeline_mode = #tpu.pipeline_mode<synchronous>, transform_indices = @transform_4, window_bounds = array<i64: 3, 24, 8>}, {pipeline_mode = #tpu.pipeline_mode<synchronous>, transform_indices = @transform_5, window_bounds = array<i64: 1, 8>}, {transform_indices = @transform_6, window_bounds = array<i64: 1, 64, 8>}]} {
    %cst = arith.constant 0.000000e+00 : f32
    %0 = vector.broadcast %cst : f32 to vector<1x10x24xf32>
    %c0 = arith.constant 0 : index
    %c0_0 = arith.constant 0 : index
    %c0_1 = arith.constant 0 : index
    %1 = vector.load %arg8[%c0, %c0_0, %c0_1] : memref<10x10x24xf32, #tpu.memory_space<vmem>>, vector<1x10x24xf32>
    tpu.vector_store %arg8[%c0, %c0_0, %c0_1], %0 {strides = array<i32>} : memref<10x10x24xf32, #tpu.memory_space<vmem>>, vector<1x10x24xf32>,
    %cst_2 = arith.constant 0.000000e+00 : f32
    %2 = vector.broadcast %cst_2 : f32 to vector<1x10x24xf32>
    %c9 = arith.constant 9 : index
    %c0_3 = arith.constant 0 : index
    %c0_4 = arith.constant 0 : index
    %3 = vector.load %arg8[%c9, %c0_3, %c0_4] : memref<10x10x24xf32, #tpu.memory_space<vmem>>, vector<1x10x24xf32>
    tpu.vector_store %arg8[%c9, %c0_3, %c0_4], %2 {strides = array<i32>} : memref<10x10x24xf32, #tpu.memory_space<vmem>>, vector<1x10x24xf32>,
    %cst_5 = arith.constant 0.000000e+00 : f32
    %4 = vector.broadcast %cst_5 : f32 to vector<10x1x24xf32>
    %c0_6 = arith.constant 0 : index
    %c0_7 = arith.constant 0 : index
    %c0_8 = arith.constant 0 : index
    %5 = vector.load %arg8[%c0_6, %c0_7, %c0_8] : memref<10x10x24xf32, #tpu.memory_space<vmem>>, vector<10x1x24xf32>
    tpu.vector_store %arg8[%c0_6, %c0_7, %c0_8], %4 {strides = array<i32>} : memref<10x10x24xf32, #tpu.memory_space<vmem>>, vector<10x1x24xf32>,
    %cst_9 = arith.constant 0.000000e+00 : f32
    %6 = vector.broadcast %cst_9 : f32 to vector<10x1x24xf32>
    %c0_10 = arith.constant 0 : index
    %c9_11 = arith.constant 9 : index
    %c0_12 = arith.constant 0 : index
    %7 = vector.load %arg8[%c0_10, %c9_11, %c0_12] : memref<10x10x24xf32, #tpu.memory_space<vmem>>, vector<10x1x24xf32>
    tpu.vector_store %arg8[%c0_10, %c9_11, %c0_12], %6 {strides = array<i32>} : memref<10x10x24xf32, #tpu.memory_space<vmem>>, vector<10x1x24xf32>,
    %cst_13 = arith.constant 0.000000e+00 : f32
    %8 = vector.broadcast %cst_13 : f32 to vector<1x10x8xf32>
    %c0_14 = arith.constant 0 : index
    %c0_15 = arith.constant 0 : index
    %c0_16 = arith.constant 0 : index
    %9 = vector.load %arg9[%c0_14, %c0_15, %c0_16] : memref<10x10x8xf32, #tpu.memory_space<vmem>>, vector<1x10x8xf32>
    tpu.vector_store %arg9[%c0_14, %c0_15, %c0_16], %8 {strides = array<i32>} : memref<10x10x8xf32, #tpu.memory_space<vmem>>, vector<1x10x8xf32>,
    %cst_17 = arith.constant 0.000000e+00 : f32
    %10 = vector.broadcast %cst_17 : f32 to vector<1x10x8xf32>
    %c9_18 = arith.constant 9 : index
    %c0_19 = arith.constant 0 : index
    %c0_20 = arith.constant 0 : index
    %11 = vector.load %arg9[%c9_18, %c0_19, %c0_20] : memref<10x10x8xf32, #tpu.memory_space<vmem>>, vector<1x10x8xf32>
    tpu.vector_store %arg9[%c9_18, %c0_19, %c0_20], %10 {strides = array<i32>} : memref<10x10x8xf32, #tpu.memory_space<vmem>>, vector<1x10x8xf32>,
    %cst_21 = arith.constant 0.000000e+00 : f32
    %12 = vector.broadcast %cst_21 : f32 to vector<10x1x8xf32>
    %c0_22 = arith.constant 0 : index
    %c0_23 = arith.constant 0 : index
    %c0_24 = arith.constant 0 : index
    %13 = vector.load %arg9[%c0_22, %c0_23, %c0_24] : memref<10x10x8xf32, #tpu.memory_space<vmem>>, vector<10x1x8xf32>
    tpu.vector_store %arg9[%c0_22, %c0_23, %c0_24], %12 {strides = array<i32>} : memref<10x10x8xf32, #tpu.memory_space<vmem>>, vector<10x1x8xf32>,
    %cst_25 = arith.constant 0.000000e+00 : f32
    %14 = vector.broadcast %cst_25 : f32 to vector<10x1x8xf32>
    %c0_26 = arith.constant 0 : index
    %c9_27 = arith.constant 9 : index
    %c0_28 = arith.constant 0 : index
    %15 = vector.load %arg9[%c0_26, %c9_27, %c0_28] : memref<10x10x8xf32, #tpu.memory_space<vmem>>, vector<10x1x8xf32>
    tpu.vector_store %arg9[%c0_26, %c9_27, %c0_28], %14 {strides = array<i32>} : memref<10x10x8xf32, #tpu.memory_space<vmem>>, vector<10x1x8xf32>,
    %c0_29 = arith.constant 0 : index
    %c0_30 = arith.constant 0 : index
    %c0_31 = arith.constant 0 : index
    %c0_32 = arith.constant 0 : index
    %16 = vector.load %arg1[%c0_29, %c0_30, %c0_31, %c0_32] : memref<1x4x4x16xf32, #tpu.memory_space<vmem>>, vector<1x4x4x16xf32>
    %17 = vector.shape_cast %16 : vector<1x4x4x16xf32> to vector<4x4x16xf32>
    %18 = vector.shape_cast %17 : vector<4x4x16xf32> to vector<4x1x4x16xf32>
    %19 = vector.shape_cast %18 : vector<4x1x4x16xf32> to vector<4x1x4x16xf32>
    %20 = vector.broadcast %19 : vector<4x1x4x16xf32> to vector<4x2x4x16xf32>
    %21 = vector.shape_cast %20 : vector<4x2x4x16xf32> to vector<8x4x16xf32>
    %22 = vector.extract_strided_slice %21 {offsets = [0, 0, 0], sizes = [8, 1, 16], strides = [1, 1, 1]} : vector<8x4x16xf32> to vector<8x1x16xf32>
    %c1 = arith.constant 1 : index
    %c1_33 = arith.constant 1 : index
    %c0_34 = arith.constant 0 : index
    %23 = vector.load %arg8[%c1, %c1_33, %c0_34] : memref<10x10x24xf32, #tpu.memory_space<vmem>>, vector<8x1x16xf32>
    tpu.vector_store %arg8[%c1, %c1_33, %c0_34], %22 {strides = array<i32>} : memref<10x10x24xf32, #tpu.memory_space<vmem>>, vector<8x1x16xf32>,
    %c1_35 = arith.constant 1 : index
    %c2 = arith.constant 2 : index
    %c0_36 = arith.constant 0 : index
    %24 = vector.load %arg8[%c1_35, %c2, %c0_36] : memref<10x10x24xf32, #tpu.memory_space<vmem>>, vector<8x1x16xf32>
    tpu.vector_store %arg8[%c1_35, %c2, %c0_36], %22 {strides = array<i32>} : memref<10x10x24xf32, #tpu.memory_space<vmem>>, vector<8x1x16xf32>,
    %25 = vector.extract_strided_slice %21 {offsets = [0, 1, 0], sizes = [8, 1, 16], strides = [1, 1, 1]} : vector<8x4x16xf32> to vector<8x1x16xf32>
    %c1_37 = arith.constant 1 : index
    %c3 = arith.constant 3 : index
    %c0_38 = arith.constant 0 : index
    %26 = vector.load %arg8[%c1_37, %c3, %c0_38] : memref<10x10x24xf32, #tpu.memory_space<vmem>>, vector<8x1x16xf32>
    tpu.vector_store %arg8[%c1_37, %c3, %c0_38], %25 {strides = array<i32>} : memref<10x10x24xf32, #tpu.memory_space<vmem>>, vector<8x1x16xf32>,
    %c1_39 = arith.constant 1 : index
    %c4 = arith.constant 4 : index
    %c0_40 = arith.constant 0 : index
    %27 = vector.load %arg8[%c1_39, %c4, %c0_40] : memref<10x10x24xf32, #tpu.memory_space<vmem>>, vector<8x1x16xf32>
    tpu.vector_store %arg8[%c1_39, %c4, %c0_40], %25 {strides = array<i32>} : memref<10x10x24xf32, #tpu.memory_space<vmem>>, vector<8x1x16xf32>,
    %28 = vector.extract_strided_slice %21 {offsets = [0, 2, 0], sizes = [8, 1, 16], strides = [1, 1, 1]} : vector<8x4x16xf32> to vector<8x1x16xf32>
    %c1_41 = arith.constant 1 : index
    %c5 = arith.constant 5 : index
    %c0_42 = arith.constant 0 : index
    %29 = vector.load %arg8[%c1_41, %c5, %c0_42] : memref<10x10x24xf32, #tpu.memory_space<vmem>>, vector<8x1x16xf32>
    tpu.vector_store %arg8[%c1_41, %c5, %c0_42], %28 {strides = array<i32>} : memref<10x10x24xf32, #tpu.memory_space<vmem>>, vector<8x1x16xf32>,
    %c1_43 = arith.constant 1 : index
    %c6 = arith.constant 6 : index
    %c0_44 = arith.constant 0 : index
    %30 = vector.load %arg8[%c1_43, %c6, %c0_44] : memref<10x10x24xf32, #tpu.memory_space<vmem>>, vector<8x1x16xf32>
    tpu.vector_store %arg8[%c1_43, %c6, %c0_44], %28 {strides = array<i32>} : memref<10x10x24xf32, #tpu.memory_space<vmem>>, vector<8x1x16xf32>,
    %31 = vector.extract_strided_slice %21 {offsets = [0, 3, 0], sizes = [8, 1, 16], strides = [1, 1, 1]} : vector<8x4x16xf32> to vector<8x1x16xf32>
    %c1_45 = arith.constant 1 : index
    %c7 = arith.constant 7 : index
    %c0_46 = arith.constant 0 : index
    %32 = vector.load %arg8[%c1_45, %c7, %c0_46] : memref<10x10x24xf32, #tpu.memory_space<vmem>>, vector<8x1x16xf32>
    tpu.vector_store %arg8[%c1_45, %c7, %c0_46], %31 {strides = array<i32>} : memref<10x10x24xf32, #tpu.memory_space<vmem>>, vector<8x1x16xf32>,
    %c1_47 = arith.constant 1 : index
    %c8 = arith.constant 8 : index
    %c0_48 = arith.constant 0 : index
    %33 = vector.load %arg8[%c1_47, %c8, %c0_48] : memref<10x10x24xf32, #tpu.memory_space<vmem>>, vector<8x1x16xf32>
    tpu.vector_store %arg8[%c1_47, %c8, %c0_48], %31 {strides = array<i32>} : memref<10x10x24xf32, #tpu.memory_space<vmem>>, vector<8x1x16xf32>,
    %c0_49 = arith.constant 0 : index
    %c0_50 = arith.constant 0 : index
    %c0_51 = arith.constant 0 : index
    %c0_52 = arith.constant 0 : index
    %34 = vector.load %arg2[%c0_49, %c0_50, %c0_51, %c0_52] : memref<1x8x8x8xf32, #tpu.memory_space<vmem>>, vector<1x8x8x8xf32>
    %35 = vector.shape_cast %34 : vector<1x8x8x8xf32> to vector<8x8x8xf32>
    %c1_53 = arith.constant 1 : index
    %c1_54 = arith.constant 1 : index
    %c16 = arith.constant 16 : index
    %36 = vector.load %arg8[%c1_53, %c1_54, %c16] : memref<10x10x24xf32, #tpu.memory_space<vmem>>, vector<8x8x8xf32>
    tpu.vector_store %arg8[%c1_53, %c1_54, %c16], %35 {strides = array<i32>} : memref<10x10x24xf32, #tpu.memory_space<vmem>>, vector<8x8x8xf32>,
    %cst_55 = arith.constant 0.000000e+00 : f32
    %37 = vector.broadcast %cst_55 : f32 to vector<64x8xf32>
    %c0_56 = arith.constant 0 : index
    %c0_57 = arith.constant 0 : index
    %c0_58 = arith.constant 0 : index
    %38 = vector.load %arg8[%c0_56, %c0_57, %c0_58] : memref<10x10x24xf32, #tpu.memory_space<vmem>>, vector<8x8x24xf32>
    %c0_59 = arith.constant 0 : index
    %c1_60 = arith.constant 1 : index
    %c0_61 = arith.constant 0 : index
    %39 = vector.load %arg8[%c0_59, %c1_60, %c0_61] : memref<10x10x24xf32, #tpu.memory_space<vmem>>, vector<8x8x24xf32>
    %c0_62 = arith.constant 0 : index
    %c2_63 = arith.constant 2 : index
    %c0_64 = arith.constant 0 : index
    %40 = vector.load %arg8[%c0_62, %c2_63, %c0_64] : memref<10x10x24xf32, #tpu.memory_space<vmem>>, vector<8x8x24xf32>
    %41 = tpu.concatenate %38, %39, %40 in 2 : vector<8x8x24xf32>, vector<8x8x24xf32>, vector<8x8x24xf32> -> vector<8x8x72xf32>
    %42 = vector.shape_cast %41 : vector<8x8x72xf32> to vector<64x72xf32>
    %c0_65 = arith.constant 0 : index
    %c0_66 = arith.constant 0 : index
    %c0_67 = arith.constant 0 : index
    %43 = vector.load %arg3[%c0_65, %c0_66, %c0_67] : memref<3x72x8xf32, #tpu.memory_space<vmem>>, vector<1x72x8xf32>
    %44 = vector.shape_cast %43 : vector<1x72x8xf32> to vector<72x8xf32>
    %cst_68 = arith.constant dense<0.000000e+00> : vector<64x8xf32>
    %45 = tpu.matmul %42, %44, %cst_68 {dimension_numbers = #tpu.dot_dimension_numbers<[1], [0], [0], [1], [0, 0, 1, 1], [], []>} : vector<64x72xf32>, vector<72x8xf32>, vector<64x8xf32> -> vector<64x8xf32>
    %46 = arith.addf %37, %45 : vector<64x8xf32>
    %c1_69 = arith.constant 1 : index
    %c0_70 = arith.constant 0 : index
    %c0_71 = arith.constant 0 : index
    %47 = vector.load %arg8[%c1_69, %c0_70, %c0_71] : memref<10x10x24xf32, #tpu.memory_space<vmem>>, vector<8x8x24xf32>
    %c1_72 = arith.constant 1 : index
    %c1_73 = arith.constant 1 : index
    %c0_74 = arith.constant 0 : index
    %48 = vector.load %arg8[%c1_72, %c1_73, %c0_74] : memref<10x10x24xf32, #tpu.memory_space<vmem>>, vector<8x8x24xf32>
    %c1_75 = arith.constant 1 : index
    %c2_76 = arith.constant 2 : index
    %c0_77 = arith.constant 0 : index
    %49 = vector.load %arg8[%c1_75, %c2_76, %c0_77] : memref<10x10x24xf32, #tpu.memory_space<vmem>>, vector<8x8x24xf32>
    %50 = tpu.concatenate %47, %48, %49 in 2 : vector<8x8x24xf32>, vector<8x8x24xf32>, vector<8x8x24xf32> -> vector<8x8x72xf32>
    %51 = vector.shape_cast %50 : vector<8x8x72xf32> to vector<64x72xf32>
    %c1_78 = arith.constant 1 : index
    %c0_79 = arith.constant 0 : index
    %c0_80 = arith.constant 0 : index
    %52 = vector.load %arg3[%c1_78, %c0_79, %c0_80] : memref<3x72x8xf32, #tpu.memory_space<vmem>>, vector<1x72x8xf32>
    %53 = vector.shape_cast %52 : vector<1x72x8xf32> to vector<72x8xf32>
    %cst_81 = arith.constant dense<0.000000e+00> : vector<64x8xf32>
    %54 = tpu.matmul %51, %53, %cst_81 {dimension_numbers = #tpu.dot_dimension_numbers<[1], [0], [0], [1], [0, 0, 1, 1], [], []>} : vector<64x72xf32>, vector<72x8xf32>, vector<64x8xf32> -> vector<64x8xf32>
    %55 = arith.addf %46, %54 : vector<64x8xf32>
    %c2_82 = arith.constant 2 : index
    %c0_83 = arith.constant 0 : index
    %c0_84 = arith.constant 0 : index
    %56 = vector.load %arg8[%c2_82, %c0_83, %c0_84] : memref<10x10x24xf32, #tpu.memory_space<vmem>>, vector<8x8x24xf32>
    %c2_85 = arith.constant 2 : index
    %c1_86 = arith.constant 1 : index
    %c0_87 = arith.constant 0 : index
    %57 = vector.load %arg8[%c2_85, %c1_86, %c0_87] : memref<10x10x24xf32, #tpu.memory_space<vmem>>, vector<8x8x24xf32>
    %c2_88 = arith.constant 2 : index
    %c2_89 = arith.constant 2 : index
    %c0_90 = arith.constant 0 : index
    %58 = vector.load %arg8[%c2_88, %c2_89, %c0_90] : memref<10x10x24xf32, #tpu.memory_space<vmem>>, vector<8x8x24xf32>
    %59 = tpu.concatenate %56, %57, %58 in 2 : vector<8x8x24xf32>, vector<8x8x24xf32>, vector<8x8x24xf32> -> vector<8x8x72xf32>
    %60 = vector.shape_cast %59 : vector<8x8x72xf32> to vector<64x72xf32>
    %c2_91 = arith.constant 2 : index
    %c0_92 = arith.constant 0 : index
    %c0_93 = arith.constant 0 : index
    %61 = vector.load %arg3[%c2_91, %c0_92, %c0_93] : memref<3x72x8xf32, #tpu.memory_space<vmem>>, vector<1x72x8xf32>
    %62 = vector.shape_cast %61 : vector<1x72x8xf32> to vector<72x8xf32>
    %cst_94 = arith.constant dense<0.000000e+00> : vector<64x8xf32>
    %63 = tpu.matmul %60, %62, %cst_94 {dimension_numbers = #tpu.dot_dimension_numbers<[1], [0], [0], [1], [0, 0, 1, 1], [], []>} : vector<64x72xf32>, vector<72x8xf32>, vector<64x8xf32> -> vector<64x8xf32>
    %64 = arith.addf %55, %63 : vector<64x8xf32>
    %c0_95 = arith.constant 0 : index
    %c0_96 = arith.constant 0 : index
    %65 = vector.load %arg4[%c0_95, %c0_96] : memref<1x8xf32, #tpu.memory_space<vmem>>, vector<1x8xf32>
    %66 = vector.broadcast %65 : vector<1x8xf32> to vector<64x8xf32>
    %67 = arith.addf %64, %66 : vector<64x8xf32>
    %cst_97 = arith.constant 0.000000e+00 : f32
    %68 = vector.broadcast %cst_97 : f32 to vector<64x8xf32>
    %69 = arith.maximumf %67, %68 : vector<64x8xf32>
    %70 = vector.shape_cast %69 : vector<64x8xf32> to vector<8x8x8xf32>
    %c1_98 = arith.constant 1 : index
    %c1_99 = arith.constant 1 : index
    %c0_100 = arith.constant 0 : index
    %71 = vector.load %arg9[%c1_98, %c1_99, %c0_100] : memref<10x10x8xf32, #tpu.memory_space<vmem>>, vector<8x8x8xf32>
    tpu.vector_store %arg9[%c1_98, %c1_99, %c0_100], %70 {strides = array<i32>} : memref<10x10x8xf32, #tpu.memory_space<vmem>>, vector<8x8x8xf32>,
    %cst_101 = arith.constant 0.000000e+00 : f32
    %72 = vector.broadcast %cst_101 : f32 to vector<64x8xf32>
    %c0_102 = arith.constant 0 : index
    %c0_103 = arith.constant 0 : index
    %c0_104 = arith.constant 0 : index
    %73 = vector.load %arg9[%c0_102, %c0_103, %c0_104] : memref<10x10x8xf32, #tpu.memory_space<vmem>>, vector<8x8x8xf32>
    %c0_105 = arith.constant 0 : index
    %c1_106 = arith.constant 1 : index
    %c0_107 = arith.constant 0 : index
    %74 = vector.load %arg9[%c0_105, %c1_106, %c0_107] : memref<10x10x8xf32, #tpu.memory_space<vmem>>, vector<8x8x8xf32>
    %c0_108 = arith.constant 0 : index
    %c2_109 = arith.constant 2 : index
    %c0_110 = arith.constant 0 : index
    %75 = vector.load %arg9[%c0_108, %c2_109, %c0_110] : memref<10x10x8xf32, #tpu.memory_space<vmem>>, vector<8x8x8xf32>
    %76 = tpu.concatenate %73, %74, %75 in 2 : vector<8x8x8xf32>, vector<8x8x8xf32>, vector<8x8x8xf32> -> vector<8x8x24xf32>
    %77 = vector.shape_cast %76 : vector<8x8x24xf32> to vector<64x24xf32>
    %c0_111 = arith.constant 0 : index
    %c0_112 = arith.constant 0 : index
    %c0_113 = arith.constant 0 : index
    %78 = vector.load %arg5[%c0_111, %c0_112, %c0_113] : memref<3x24x8xf32, #tpu.memory_space<vmem>>, vector<1x24x8xf32>
    %79 = vector.shape_cast %78 : vector<1x24x8xf32> to vector<24x8xf32>
    %cst_114 = arith.constant dense<0.000000e+00> : vector<64x8xf32>
    %80 = tpu.matmul %77, %79, %cst_114 {dimension_numbers = #tpu.dot_dimension_numbers<[1], [0], [0], [1], [0, 0, 1, 1], [], []>} : vector<64x24xf32>, vector<24x8xf32>, vector<64x8xf32> -> vector<64x8xf32>
    %81 = arith.addf %72, %80 : vector<64x8xf32>
    %c1_115 = arith.constant 1 : index
    %c0_116 = arith.constant 0 : index
    %c0_117 = arith.constant 0 : index
    %82 = vector.load %arg9[%c1_115, %c0_116, %c0_117] : memref<10x10x8xf32, #tpu.memory_space<vmem>>, vector<8x8x8xf32>
    %c1_118 = arith.constant 1 : index
    %c1_119 = arith.constant 1 : index
    %c0_120 = arith.constant 0 : index
    %83 = vector.load %arg9[%c1_118, %c1_119, %c0_120] : memref<10x10x8xf32, #tpu.memory_space<vmem>>, vector<8x8x8xf32>
    %c1_121 = arith.constant 1 : index
    %c2_122 = arith.constant 2 : index
    %c0_123 = arith.constant 0 : index
    %84 = vector.load %arg9[%c1_121, %c2_122, %c0_123] : memref<10x10x8xf32, #tpu.memory_space<vmem>>, vector<8x8x8xf32>
    %85 = tpu.concatenate %82, %83, %84 in 2 : vector<8x8x8xf32>, vector<8x8x8xf32>, vector<8x8x8xf32> -> vector<8x8x24xf32>
    %86 = vector.shape_cast %85 : vector<8x8x24xf32> to vector<64x24xf32>
    %c1_124 = arith.constant 1 : index
    %c0_125 = arith.constant 0 : index
    %c0_126 = arith.constant 0 : index
    %87 = vector.load %arg5[%c1_124, %c0_125, %c0_126] : memref<3x24x8xf32, #tpu.memory_space<vmem>>, vector<1x24x8xf32>
    %88 = vector.shape_cast %87 : vector<1x24x8xf32> to vector<24x8xf32>
    %cst_127 = arith.constant dense<0.000000e+00> : vector<64x8xf32>
    %89 = tpu.matmul %86, %88, %cst_127 {dimension_numbers = #tpu.dot_dimension_numbers<[1], [0], [0], [1], [0, 0, 1, 1], [], []>} : vector<64x24xf32>, vector<24x8xf32>, vector<64x8xf32> -> vector<64x8xf32>
    %90 = arith.addf %81, %89 : vector<64x8xf32>
    %c2_128 = arith.constant 2 : index
    %c0_129 = arith.constant 0 : index
    %c0_130 = arith.constant 0 : index
    %91 = vector.load %arg9[%c2_128, %c0_129, %c0_130] : memref<10x10x8xf32, #tpu.memory_space<vmem>>, vector<8x8x8xf32>
    %c2_131 = arith.constant 2 : index
    %c1_132 = arith.constant 1 : index
    %c0_133 = arith.constant 0 : index
    %92 = vector.load %arg9[%c2_131, %c1_132, %c0_133] : memref<10x10x8xf32, #tpu.memory_space<vmem>>, vector<8x8x8xf32>
    %c2_134 = arith.constant 2 : index
    %c2_135 = arith.constant 2 : index
    %c0_136 = arith.constant 0 : index
    %93 = vector.load %arg9[%c2_134, %c2_135, %c0_136] : memref<10x10x8xf32, #tpu.memory_space<vmem>>, vector<8x8x8xf32>
    %94 = tpu.concatenate %91, %92, %93 in 2 : vector<8x8x8xf32>, vector<8x8x8xf32>, vector<8x8x8xf32> -> vector<8x8x24xf32>
    %95 = vector.shape_cast %94 : vector<8x8x24xf32> to vector<64x24xf32>
    %c2_137 = arith.constant 2 : index
    %c0_138 = arith.constant 0 : index
    %c0_139 = arith.constant 0 : index
    %96 = vector.load %arg5[%c2_137, %c0_138, %c0_139] : memref<3x24x8xf32, #tpu.memory_space<vmem>>, vector<1x24x8xf32>
    %97 = vector.shape_cast %96 : vector<1x24x8xf32> to vector<24x8xf32>
    %cst_140 = arith.constant dense<0.000000e+00> : vector<64x8xf32>
    %98 = tpu.matmul %95, %97, %cst_140 {dimension_numbers = #tpu.dot_dimension_numbers<[1], [0], [0], [1], [0, 0, 1, 1], [], []>} : vector<64x24xf32>, vector<24x8xf32>, vector<64x8xf32> -> vector<64x8xf32>
    %99 = arith.addf %90, %98 : vector<64x8xf32>
    %c0_141 = arith.constant 0 : index
    %c0_142 = arith.constant 0 : index
    %100 = vector.load %arg6[%c0_141, %c0_142] : memref<1x8xf32, #tpu.memory_space<vmem>>, vector<1x8xf32>
    %101 = vector.broadcast %100 : vector<1x8xf32> to vector<64x8xf32>
    %102 = arith.addf %99, %101 : vector<64x8xf32>
    %cst_143 = arith.constant 0.000000e+00 : f32
    %103 = vector.broadcast %cst_143 : f32 to vector<64x8xf32>
    %104 = arith.maximumf %102, %103 : vector<64x8xf32>
    %c0_144 = arith.constant 0 : index
    %c0_145 = arith.constant 0 : index
    %c0_146 = arith.constant 0 : index
    %105 = vector.load %arg7[%c0_144, %c0_145, %c0_146] : memref<1x64x8xf32, #tpu.memory_space<vmem>>, vector<1x64x8xf32>
    %106 = vector.shape_cast %105 : vector<1x64x8xf32> to vector<64x8xf32>
    %107 = vector.shape_cast %104 : vector<64x8xf32> to vector<1x64x8xf32>
    tpu.vector_store %arg7[%c0_144, %c0_145, %c0_146], %107 {strides = array<i32>} : memref<1x64x8xf32, #tpu.memory_space<vmem>>, vector<1x64x8xf32>,
    return
  }
  func.func @transform_0(%arg0: i32) -> (i32, i32, i32, i32) {
    %c0_i32 = arith.constant 0 : i32
    %c0_i32_0 = arith.constant 0 : i32
    %c0_i32_1 = arith.constant 0 : i32
    %c0_i32_2 = arith.constant 0 : i32
    return %arg0, %c0_i32, %c0_i32_0, %c0_i32_1 : i32, i32, i32, i32
  }
  func.func @transform_1(%arg0: i32) -> (i32, i32, i32, i32) {
    %c0_i32 = arith.constant 0 : i32
    %c0_i32_0 = arith.constant 0 : i32
    %c0_i32_1 = arith.constant 0 : i32
    %c0_i32_2 = arith.constant 0 : i32
    return %arg0, %c0_i32, %c0_i32_0, %c0_i32_1 : i32, i32, i32, i32
  }
  func.func @transform_2(%arg0: i32) -> (i32, i32, i32) {
    %c0_i32 = arith.constant 0 : i32
    %c0_i32_0 = arith.constant 0 : i32
    %c0_i32_1 = arith.constant 0 : i32
    %c0_i32_2 = arith.constant 0 : i32
    return %c0_i32, %c0_i32_0, %c0_i32_1 : i32, i32, i32
  }
  func.func @transform_3(%arg0: i32) -> (i32, i32) {
    %c0_i32 = arith.constant 0 : i32
    %c0_i32_0 = arith.constant 0 : i32
    %c0_i32_1 = arith.constant 0 : i32
    return %c0_i32, %c0_i32_0 : i32, i32
  }
  func.func @transform_4(%arg0: i32) -> (i32, i32, i32) {
    %c0_i32 = arith.constant 0 : i32
    %c0_i32_0 = arith.constant 0 : i32
    %c0_i32_1 = arith.constant 0 : i32
    %c0_i32_2 = arith.constant 0 : i32
    return %c0_i32, %c0_i32_0, %c0_i32_1 : i32, i32, i32
  }
  func.func @transform_5(%arg0: i32) -> (i32, i32) {
    %c0_i32 = arith.constant 0 : i32
    %c0_i32_0 = arith.constant 0 : i32
    %c0_i32_1 = arith.constant 0 : i32
    return %c0_i32, %c0_i32_0 : i32, i32
  }
  func.func @transform_6(%arg0: i32) -> (i32, i32, i32) {
    %c0_i32 = arith.constant 0 : i32
    %c0_i32_0 = arith.constant 0 : i32
    %c0_i32_1 = arith.constant 0 : i32
    return %arg0, %c0_i32, %c0_i32_0 : i32, i32, i32
  }
}

</mosaic_0001>

<bundles_post_ra>
// kernel: tpu_custom_call.1
= control target key start
LH: loop header
LB: loop body
LE: loop exit
PB: predicated region body
PF: predicated region fallthrough
CT: control target
= control target key end

     0   :  { %s2510_s21 = smov 0   ;;  %s3229_s0 = inlined_call_operand.vmem [shape: f32[2,4,4,16], index: 0, kind: input, shape index: {}]   ;;  %s3230_s1 = inlined_call_operand.vmem [shape: f32[2,8,8,8], index: 1, kind: input, shape index: {}]   ;;  %s3231_s2 = inlined_call_operand.vmem [shape: f32[3,72,8], index: 2, kind: input, shape index: {}]   ;;  %s3232_s3 = inlined_call_operand.vmem [shape: f32[1,8], index: 3, kind: input, shape index: {}]   ;;  %s3233_s4 = inlined_call_operand.vmem [shape: f32[3,24,8], index: 4, kind: input, shape index: {}]   ;;  %s3234_s5 = inlined_call_operand.vmem [shape: f32[1,8], index: 5, kind: input, shape index: {}]   ;;  %s3235_s6 = inlined_call_operand.vmem [shape: f32[2,64,8], index: 6, kind: output, shape index: {}]  }
   0x1 LB: > { %s2039_s22 = sadd.s32 4294967295, %s2468_s21   ;;  %p2043_p0 = scmp.ge.s32.totalorder %s2468_s21, 1  ;;  %s2468_s21 = sphi %s2510_s21, %s16_s21  }
   0x2   : > { %p222_p1 = scmp.lt.s32.totalorder %s2468_s21, 3 }
   0x4   : > { %p223_p2 = pnand %p2043_p0, %p222_p1 }
   0x5   : > { %p257_p3 = scmp.lt.s32.totalorder (!%p223_p2), %s2039_s22, 1  ;;  %vm272_vm0 = vcmask (!%p223_p2), 195584   ;;  %vm274_vm1 = vcmask (!%p223_p2), 189440   ;;  %v2470_v0 = vmov (!%p223_p2), 0.0   ;;  %vm279_vm2 = vcmask (!%p223_p2), 188416   ;;  %s2471_s7 = smov (!%p223_p2), 16  }
   0x6   : > { %226 = sbr.rel (%p223_p2) target bundleno = 978 (0x3d2), region = 44  ;;  %273 = vst.msk [vmem:[#allocation2] sm:$0xff] (!%p223_p2), %vm272_vm0, %v2470_v0  ;;  %277 = vst.msk [vmem:[#allocation2 + $0x90] sm:$0xff] (!%p223_p2), %vm272_vm0, %v2470_v0  ;;  %vm333_vm3 = vcmask (!%p223_p2), 122880   ;;  %vm350_vm4 = vcmask (!%p223_p2), 123905   ;;  %vm367_vm5 = vcmask (!%p223_p2), 124930  }
   0x7   : > { %275 = vst.msk [vmem:[#allocation2 + $0x8] sm:$0x3] (!%p223_p2), %vm274_vm1, %v2470_v0  ;;  %278 = vst.msk [vmem:[#allocation2 + $0x98] sm:$0x3] (!%p223_p2), %vm274_vm1, %v2470_v0  ;;  %vm384_vm6 = vcmask (!%p223_p2), 125955   ;;  %s2472_s8 = smov (!%p223_p2), 24  }
   0x8   : > { %290 = vst.msk [vmem:[#allocation2 + $0x9] sm:$0x1] (!%p223_p2), %vm279_vm2, %v2470_v0  ;;  %280 = vst.msk [vmem:[#allocation2] sm:$0x1] (!%p223_p2), %vm279_vm2, %v2470_v0  ;;  %s2473_s9 = smov (!%p223_p2), 48   ;;  %v2050_v16 = vld [vmem:[%s3231_s2 + $0x48] sm:$0xff] (!%p223_p2) }
   0x9   : > { %281 = vst.msk [vmem:[#allocation2 + $0x10] sm:$0x1] (!%p223_p2), %vm279_vm2, %v2470_v0  ;;  %282 = vst.msk [vmem:[#allocation2 + $0x20] sm:$0x1] (!%p223_p2), %vm279_vm2, %v2470_v0  ;;  %v2051_v17 = vld [vmem:[%s3231_s2 + $0x50] sm:$0xff] (!%p223_p2)  ;;  %v2052_v19 = vld [vmem:[%s3231_s2 + $0x58] sm:$0xff] (!%p223_p2) }
   0xa   : > { %283 = vst.msk [vmem:[#allocation2 + $0x30] sm:$0x1] (!%p223_p2), %vm279_vm2, %v2470_v0  ;;  %284 = vst.msk [vmem:[#allocation2 + $0x40] sm:$0x1] (!%p223_p2), %vm279_vm2, %v2470_v0  ;;  %v2357_v18 = vpack.c.bf16 (!%p223_p2), %v2051_v17, %v2050_v16  ;;  %v2053_v20 = vld [vmem:[%s3231_s2 + $0x60] sm:$0xff] (!%p223_p2)  ;;  %v2054_v22 = vld [vmem:[%s3231_s2 + $0x68] sm:$0xff] (!%p223_p2) }
   0xb   : > { %285 = vst.msk [vmem:[#allocation2 + $0x50] sm:$0x1] (!%p223_p2), %vm279_vm2, %v2470_v0  ;;  %286 = vst.msk [vmem:[#allocation2 + $0x60] sm:$0x1] (!%p223_p2), %vm279_vm2, %v2470_v0  ;;  %v2361_v21 = vpack.c.bf16 (!%p223_p2), %v2053_v20, %v2052_v19  ;;  %v2055_v23 = vld [vmem:[%s3231_s2 + $0x70] sm:$0xff] (!%p223_p2)  ;;  %v2056_v25 = vld [vmem:[%s3231_s2 + $0x78] sm:$0xff] (!%p223_p2) }
   0xc   : > { %287 = vst.msk [vmem:[#allocation2 + $0x70] sm:$0x1] (!%p223_p2), %vm279_vm2, %v2470_v0  ;;  %288 = vst.msk [vmem:[#allocation2 + $0x80] sm:$0x1] (!%p223_p2), %vm279_vm2, %v2470_v0  ;;  %2358 = vmatprep.subr.bf16.mxu0 (!%p223_p2), %v2357_v18  ;;  %v2365_v24 = vpack.c.bf16 (!%p223_p2), %v2055_v23, %v2054_v22  ;;  %v2057_v26 = vld [vmem:[%s3231_s2 + $0x80] sm:$0xff] (!%p223_p2)  ;;  %vm441_vm7 = vcmask (!%p223_p2), 195712  }
   0xd   : > { %s3237_s22 = smov (!%p257_p3, %s2039_s22), 1  ;;  %289 = vst.msk [vmem:[#allocation2 + $0x90] sm:$0x1] %vm279_vm2, %v2470_v0  ;;  %291 = vst.msk [vmem:[#allocation2 + $0x19] sm:$0x1] %vm279_vm2, %v2470_v0  ;;  %2360 = vmatpush3.bf16.msra.mxu0 %v2357_v18  ;;  %v2369_v27 = vpack.c.bf16 %v2057_v26, %v2056_v25  ;;  %v2058_v30 = vld [vmem:[%s3231_s2 + $0x88] sm:$0xff] }
   0xe   : > { %292 = vst.msk [vmem:[#allocation2 + $0x29] sm:$0x1] %vm279_vm2, %v2470_v0  ;;  %293 = vst.msk [vmem:[#allocation2 + $0x39] sm:$0x1] %vm279_vm2, %v2470_v0  ;;  %s2127_s23 = sshll.u32 %s3237_s22, 6  ;;  %s2126_s24 = sshll.u32 %s3237_s22, 4  ;;  %2362 = vmatprep.subr.bf16.mxu0 %v2361_v21 }
   0xf   : > { %294 = vst.msk [vmem:[#allocation2 + $0x49] sm:$0x1] %vm279_vm2, %v2470_v0  ;;  %295 = vst.msk [vmem:[#allocation2 + $0x59] sm:$0x1] %vm279_vm2, %v2470_v0  ;;  %s2573_s27 = scalar_lea.vmem %s3230_s1, %s2127_s23  ;;  %s261_s30 = scalar_lea.vmem %s3229_s0, %s2126_s24  ;;  %v458_v13 = vld [vmem:[#allocation2 + $0x1] sm:$0xff]  ;;  %v953_v14 = vld [vmem:[#allocation2 + $0x91] sm:$0xff] }
  0x10   : > { %296 = vst.msk [vmem:[#allocation2 + $0x69] sm:$0x1] %vm279_vm2, %v2470_v0  ;;  %297 = vst.msk [vmem:[#allocation2 + $0x79] sm:$0x1] %vm279_vm2, %v2470_v0  ;;  %v401_v1 = vld [vmem:[%s2573_s27] sm:$0xff]  ;;  %v403_v2 = vld [vmem:[%s2573_s27 + $0x10] sm:$0xff]  ;;  %s271_s10 = scalar_lea.vmem %s3235_s6, %s2127_s23 }
  0x11   : > { %298 = vst.msk [vmem:[#allocation2 + $0x89] sm:$0x1] %vm279_vm2, %v2470_v0  ;;  %299 = vst.msk [vmem:[#allocation2 + $0x99] sm:$0x1] %vm279_vm2, %v2470_v0  ;;  %417 = vrot.lane.b32.xlu0 %v401_v1, %s2471_s7  ;;  %v328_v3 = vld [vmem:[%s261_s30] sm:$0xf]  ;;  %421 = vrot.lane.b32.xlu1 %v403_v2, %s2471_s7 }
  0x12   : > { %v329_v4 = vld [vmem:[%s261_s30 + $0x4] sm:$0xf]  ;;  %v330_v5 = vld [vmem:[%s261_s30 + $0x8] sm:$0xf]  ;;  %v2581_v6 = vld [vmem:[%s261_s30 + $0xc] sm:$0xf]  ;;  %2364 = vmatpush3.bf16.msra.mxu0 %v2361_v21 }
  0x13   : > { %v2584_v7 = vld [vmem:[%s2573_s27 + $0x8] sm:$0xff]  ;;  %334 = vst.msk [vmem:[#allocation2 + $0x11] sm:$0x1] %vm333_vm3, %v328_v3  ;;  %342 = vst.msk [vmem:[#allocation2 + $0x12] sm:$0x1] %vm333_vm3, %v328_v3  ;;  %v404_v8 = vld [vmem:[%s2573_s27 + $0x18] sm:$0xff]  ;;  %2366 = vmatprep.subr.bf16.mxu0 %v2365_v24 }
  0x14   : > { %351 = vst.msk [vmem:[#allocation2 + $0x12] sm:$0x2] %vm350_vm4, %v328_v3  ;;  %359 = vst.msk [vmem:[#allocation2 + $0x13] sm:$0x2] %vm350_vm4, %v328_v3  ;;  %v405_v9 = vld [vmem:[%s2573_s27 + $0x20] sm:$0xff]  ;;  %v406_v10 = vld [vmem:[%s2573_s27 + $0x28] sm:$0xff] }
  0x15   : > { %368 = vst.msk [vmem:[#allocation2 + $0x13] sm:$0x4] %vm367_vm5, %v328_v3  ;;  %376 = vst.msk [vmem:[#allocation2 + $0x14] sm:$0x4] %vm367_vm5, %v328_v3  ;;  %419 = vrot.lane.b32.xlu0 %v2584_v7, %s2471_s7  ;;  %423 = vrot.lane.b32.xlu1 %v404_v8, %s2471_s7  ;;  %v407_v11 = vld [vmem:[%s2573_s27 + $0x30] sm:$0xff]  ;;  %v408_v12 = vld [vmem:[%s2573_s27 + $0x38] sm:$0xff] }
  0x16   : > { %385 = vst.msk [vmem:[#allocation2 + $0x14] sm:$0x8] %vm384_vm6, %v328_v3  ;;  %393 = vst.msk [vmem:[#allocation2 + $0x15] sm:$0x8] %vm384_vm6, %v328_v3  ;;  %v466_v15 = vld [vmem:[#allocation2 + $0x2] sm:$0xff]  ;;  %2368 = vmatpush3.bf16.msra.mxu0 %v2365_v24  ;;  %vm300_vm8 = vcmask 64512  }
  0x17   : > { %335 = vst.msk [vmem:[#allocation2 + $0x21] sm:$0x1] %vm333_vm3, %v328_v3  ;;  %336 = vst.msk [vmem:[#allocation2 + $0x31] sm:$0x1] %vm333_vm3, %v329_v4  ;;  %2370 = vmatprep.subr.bf16.mxu0 %v2369_v27  ;;  %v555_v43 = vld [vmem:[%s3231_s2] sm:$0xff]  ;;  %v556_v44 = vld [vmem:[%s3231_s2 + $0x8] sm:$0xff] }
  0x18   : > { %337 = vst.msk [vmem:[#allocation2 + $0x41] sm:$0x1] %vm333_vm3, %v329_v4  ;;  %338 = vst.msk [vmem:[#allocation2 + $0x51] sm:$0x1] %vm333_vm3, %v330_v5  ;;  %v2728_v45 = vpack.c.bf16 %v556_v44, %v555_v43  ;;  %v961_v56 = vld [vmem:[#allocation2 + $0x92] sm:$0xff]  ;;  %vm546_vm9 = vcmask 392192  }
  0x19   : > { %339 = vst.msk [vmem:[#allocation2 + $0x61] sm:$0x1] %vm333_vm3, %v330_v5  ;;  %343 = vst.msk [vmem:[#allocation2 + $0x22] sm:$0x1] %vm333_vm3, %v328_v3  ;;  %425 = vrot.lane.b32.xlu0 %v405_v9, %s2471_s7  ;;  %427 = vrot.lane.b32.xlu1 %v406_v10, %s2471_s7  ;;  %vm678_vm10 = vcmask 588800   ;;  %v561_v19 = vld [vmem:[%s3231_s2 + $0x30] sm:$0xff] }
  0x1a   : > { %344 = vst.msk [vmem:[#allocation2 + $0x32] sm:$0x1] %vm333_vm3, %v329_v4  ;;  %345 = vst.msk [vmem:[#allocation2 + $0x42] sm:$0x1] %vm333_vm3, %v329_v4  ;;  %2372 = vmatpush3.bf16.msra.mxu0 %v2369_v27  ;;  %v562_v20 = vld [vmem:[%s3231_s2 + $0x38] sm:$0xff]  ;;  %vm302_vm11 = vcmask 58368  }
  0x1b   : > { %346 = vst.msk [vmem:[#allocation2 + $0x52] sm:$0x1] %vm333_vm3, %v330_v5  ;;  %347 = vst.msk [vmem:[#allocation2 + $0x62] sm:$0x1] %vm333_vm3, %v330_v5  ;;  %2229 = vmatprep.subr.mxu0 %v2058_v30  ;;  %v2385_v25 = vpack.c.bf16 %v562_v20, %v561_v19  ;;  %vm307_vm12 = vcmask 57344   ;;  %s2474_s27 = smov 8  }
  0x1c   : > { %352 = vst.msk [vmem:[#allocation2 + $0x22] sm:$0x2] %vm350_vm4, %v328_v3  ;;  %353 = vst.msk [vmem:[#allocation2 + $0x32] sm:$0x2] %vm350_vm4, %v329_v4  ;;  %vm1317_vm13 = vcmask 130048  }
  0x1d   : > { %354 = vst.msk [vmem:[#allocation2 + $0x42] sm:$0x2] %vm350_vm4, %v329_v4  ;;  %355 = vst.msk [vmem:[#allocation2 + $0x52] sm:$0x2] %vm350_vm4, %v330_v5  ;;  %429 = vrot.lane.b32.xlu0 %v407_v11, %s2471_s7  ;;  %431 = vrot.lane.b32.xlu1 %v408_v12, %s2471_s7  ;;  %v559_v11 = vld [vmem:[%s3231_s2 + $0x20] sm:$0xff]  ;;  %v560_v12 = vld [vmem:[%s3231_s2 + $0x28] sm:$0xff] }
  0x1e   : > { %356 = vst.msk [vmem:[#allocation2 + $0x62] sm:$0x2] %vm350_vm4, %v330_v5  ;;  %360 = vst.msk [vmem:[#allocation2 + $0x23] sm:$0x2] %vm350_vm4, %v328_v3  ;;  %2230 = vmatpush3.msra.mxu0 %v2058_v30  ;;  %v2381_v17 = vpack.c.bf16 %v560_v12, %v559_v11 }
  0x1f   : > { %361 = vst.msk [vmem:[#allocation2 + $0x33] sm:$0x2] %vm350_vm4, %v329_v4  ;;  %362 = vst.msk [vmem:[#allocation2 + $0x43] sm:$0x2] %vm350_vm4, %v329_v4  ;;  %2374 = vmatprep.subr.bf16.mxu0 %v2728_v45 }
  0x20   : > { %363 = vst.msk [vmem:[#allocation2 + $0x53] sm:$0x2] %vm350_vm4, %v330_v5  ;;  %364 = vst.msk [vmem:[#allocation2 + $0x63] sm:$0x2] %vm350_vm4, %v330_v5 }
  0x21   : > { %369 = vst.msk [vmem:[#allocation2 + $0x23] sm:$0x4] %vm367_vm5, %v328_v3  ;;  %370 = vst.msk [vmem:[#allocation2 + $0x33] sm:$0x4] %vm367_vm5, %v329_v4  ;;  %482 = vrot.lane.b32.xlu0 %v458_v13, %s2472_s8  ;;  %984 = vrot.lane.b32.xlu1 %v953_v14, %s2472_s8 }
  0x22   : > { %371 = vst.msk [vmem:[#allocation2 + $0x43] sm:$0x4] %vm367_vm5, %v329_v4  ;;  %372 = vst.msk [vmem:[#allocation2 + $0x53] sm:$0x4] %vm367_vm5, %v330_v5 }
  0x23   : > { %373 = vst.msk [vmem:[#allocation2 + $0x63] sm:$0x4] %vm367_vm5, %v330_v5  ;;  %377 = vst.msk [vmem:[#allocation2 + $0x24] sm:$0x4] %vm367_vm5, %v328_v3 }
  0x24   : > { %378 = vst.msk [vmem:[#allocation2 + $0x34] sm:$0x4] %vm367_vm5, %v329_v4  ;;  %379 = vst.msk [vmem:[#allocation2 + $0x44] sm:$0x4] %vm367_vm5, %v329_v4 }
  0x25   : > { %380 = vst.msk [vmem:[#allocation2 + $0x54] sm:$0x4] %vm367_vm5, %v330_v5  ;;  %381 = vst.msk [vmem:[#allocation2 + $0x64] sm:$0x4] %vm367_vm5, %v330_v5  ;;  %514 = vrot.lane.b32.xlu0 %v466_v15, %s2473_s9 }
  0x26   : > { %386 = vst.msk [vmem:[#allocation2 + $0x24] sm:$0x8] %vm384_vm6, %v328_v3  ;;  %387 = vst.msk [vmem:[#allocation2 + $0x34] sm:$0x8] %vm384_vm6, %v329_v4 }
  0x27   : > { %388 = vst.msk [vmem:[#allocation2 + $0x44] sm:$0x8] %vm384_vm6, %v329_v4  ;;  %389 = vst.msk [vmem:[#allocation2 + $0x54] sm:$0x8] %vm384_vm6, %v330_v5 }
  0x28   : > { %390 = vst.msk [vmem:[#allocation2 + $0x64] sm:$0x8] %vm384_vm6, %v330_v5  ;;  %394 = vst.msk [vmem:[#allocation2 + $0x25] sm:$0x8] %vm384_vm6, %v328_v3  ;;  %v557_v3 = vld [vmem:[%s3231_s2 + $0x10] sm:$0xff] }
  0x29   : > { %395 = vst.msk [vmem:[#allocation2 + $0x35] sm:$0x8] %vm384_vm6, %v329_v4  ;;  %396 = vst.msk [vmem:[#allocation2 + $0x45] sm:$0x8] %vm384_vm6, %v329_v4  ;;  %v558_v4 = vld [vmem:[%s3231_s2 + $0x18] sm:$0xff] }
  0x2a   : > { %397 = vst.msk [vmem:[#allocation2 + $0x55] sm:$0x8] %vm384_vm6, %v330_v5  ;;  %398 = vst.msk [vmem:[#allocation2 + $0x65] sm:$0x8] %vm384_vm6, %v330_v5  ;;  %v2377_v9 = vpack.c.bf16 %v558_v4, %v557_v3  ;;  %v2079_v3 = vld [vmem:[%s3231_s2 + $0xb0] sm:$0xff]  ;;  %v2080_v4 = vld [vmem:[%s3231_s2 + $0xb8] sm:$0xff] }
  0x2b   : > { %340 = vst.msk [vmem:[#allocation2 + $0x71] sm:$0x1] %vm333_vm3, %v2581_v6  ;;  %341 = vst.msk [vmem:[#allocation2 + $0x81] sm:$0x1] %vm333_vm3, %v2581_v6 }
  0x2c   : > { %348 = vst.msk [vmem:[#allocation2 + $0x72] sm:$0x1] %vm333_vm3, %v2581_v6  ;;  %349 = vst.msk [vmem:[#allocation2 + $0x82] sm:$0x1] %vm333_vm3, %v2581_v6 }
  0x2d   : > { %357 = vst.msk [vmem:[#allocation2 + $0x72] sm:$0x2] %vm350_vm4, %v2581_v6  ;;  %358 = vst.msk [vmem:[#allocation2 + $0x82] sm:$0x2] %vm350_vm4, %v2581_v6 }
  0x2e   : > { %365 = vst.msk [vmem:[#allocation2 + $0x73] sm:$0x2] %vm350_vm4, %v2581_v6  ;;  %366 = vst.msk [vmem:[#allocation2 + $0x83] sm:$0x2] %vm350_vm4, %v2581_v6 }
  0x2f   : > { %374 = vst.msk [vmem:[#allocation2 + $0x73] sm:$0x4] %vm367_vm5, %v2581_v6  ;;  %375 = vst.msk [vmem:[#allocation2 + $0x83] sm:$0x4] %vm367_vm5, %v2581_v6 }
  0x30   : > { %382 = vst.msk [vmem:[#allocation2 + $0x74] sm:$0x4] %vm367_vm5, %v2581_v6  ;;  %383 = vst.msk [vmem:[#allocation2 + $0x84] sm:$0x4] %vm367_vm5, %v2581_v6 }
  0x31   : > { %391 = vst.msk [vmem:[#allocation2 + $0x74] sm:$0x8] %vm384_vm6, %v2581_v6  ;;  %392 = vst.msk [vmem:[#allocation2 + $0x84] sm:$0x8] %vm384_vm6, %v2581_v6 }
  0x32   : > { %399 = vst.msk [vmem:[#allocation2 + $0x75] sm:$0x8] %vm384_vm6, %v2581_v6  ;;  %400 = vst.msk [vmem:[#allocation2 + $0x85] sm:$0x8] %vm384_vm6, %v2581_v6 }
  0x33   : > { %301 = vst.msk [vmem:[#allocation3] sm:$0xff] %vm300_vm8, %v2470_v0  ;;  %305 = vst.msk [vmem:[#allocation3 + $0x90] sm:$0xff] %vm300_vm8, %v2470_v0 }
  0x34   : > { %303 = vst.msk [vmem:[#allocation3 + $0x8] sm:$0x3] %vm302_vm11, %v2470_v0  ;;  %306 = vst.msk [vmem:[#allocation3 + $0x98] sm:$0x3] %vm302_vm11, %v2470_v0 }
  0x35   : > { %318 = vst.msk [vmem:[#allocation3 + $0x9] sm:$0x1] %vm307_vm12, %v2470_v0  ;;  %308 = vst.msk [vmem:[#allocation3] sm:$0x1] %vm307_vm12, %v2470_v0 }
  0x36   : > { %309 = vst.msk [vmem:[#allocation3 + $0x10] sm:$0x1] %vm307_vm12, %v2470_v0  ;;  %310 = vst.msk [vmem:[#allocation3 + $0x20] sm:$0x1] %vm307_vm12, %v2470_v0 }
  0x37   : > { %311 = vst.msk [vmem:[#allocation3 + $0x30] sm:$0x1] %vm307_vm12, %v2470_v0  ;;  %312 = vst.msk [vmem:[#allocation3 + $0x40] sm:$0x1] %vm307_vm12, %v2470_v0 }
  0x38   : > { %313 = vst.msk [vmem:[#allocation3 + $0x50] sm:$0x1] %vm307_vm12, %v2470_v0  ;;  %314 = vst.msk [vmem:[#allocation3 + $0x60] sm:$0x1] %vm307_vm12, %v2470_v0 }
  0x39   : > { %315 = vst.msk [vmem:[#allocation3 + $0x70] sm:$0x1] %vm307_vm12, %v2470_v0  ;;  %316 = vst.msk [vmem:[#allocation3 + $0x80] sm:$0x1] %vm307_vm12, %v2470_v0 }
  0x3a   : > { %317 = vst.msk [vmem:[#allocation3 + $0x90] sm:$0x1] %vm307_vm12, %v2470_v0  ;;  %319 = vst.msk [vmem:[#allocation3 + $0x19] sm:$0x1] %vm307_vm12, %v2470_v0 }
  0x3b   : > { %320 = vst.msk [vmem:[#allocation3 + $0x29] sm:$0x1] %vm307_vm12, %v2470_v0  ;;  %321 = vst.msk [vmem:[#allocation3 + $0x39] sm:$0x1] %vm307_vm12, %v2470_v0 }
  0x3c   : > { %322 = vst.msk [vmem:[#allocation3 + $0x49] sm:$0x1] %vm307_vm12, %v2470_v0  ;;  %323 = vst.msk [vmem:[#allocation3 + $0x59] sm:$0x1] %vm307_vm12, %v2470_v0 }
  0x3d   : > { %324 = vst.msk [vmem:[#allocation3 + $0x69] sm:$0x1] %vm307_vm12, %v2470_v0  ;;  %325 = vst.msk [vmem:[#allocation3 + $0x79] sm:$0x1] %vm307_vm12, %v2470_v0 }
  0x3e   : > { %326 = vst.msk [vmem:[#allocation3 + $0x89] sm:$0x1] %vm307_vm12, %v2470_v0  ;;  %327 = vst.msk [vmem:[#allocation3 + $0x99] sm:$0x1] %vm307_vm12, %v2470_v0  ;;  %v2093_v0 = vld [vmem:[%s3233_s4 + $0x18] sm:$0xff] }
  0x83   : > { %v418_v28 = vpop.permute.xlu0 %417  ;;  %v422_v29 = vpop.permute.xlu1 %421 }
  0x84   : > { %442 = vst.msk [vmem:[#allocation2 + $0x11] sm:$0xff] %vm441_vm7, %v418_v28  ;;  %444 = vst.msk [vmem:[#allocation2 + $0x31] sm:$0xff] %vm441_vm7, %v422_v29 }
  0x87   : > { %v420_v31 = vpop.permute.xlu0 %419  ;;  %v424_v32 = vpop.permute.xlu1 %423 }
  0x88   : > { %443 = vst.msk [vmem:[#allocation2 + $0x21] sm:$0xff] %vm441_vm7, %v420_v31  ;;  %445 = vst.msk [vmem:[#allocation2 + $0x41] sm:$0xff] %vm441_vm7, %v424_v32  ;;  %v563_v32 = vld [vmem:[%s3231_s2 + $0x40] sm:$0xff] }
  0x8b   : > { %v572_v33 = vld [vmem:[#allocation2 + $0x11] sm:$0xff]  ;;  %v426_v34 = vpop.permute.xlu0 %425  ;;  %v428_v35 = vpop.permute.xlu1 %427 }
  0x8c   : > { %596 = vrot.lane.b32.xlu0 %v572_v33, %s2472_s8  ;;  %446 = vst.msk [vmem:[#allocation2 + $0x51] sm:$0xff] %vm441_vm7, %v426_v34  ;;  %447 = vst.msk [vmem:[#allocation2 + $0x61] sm:$0xff] %vm441_vm7, %v428_v35  ;;  %v580_v37 = vld [vmem:[#allocation2 + $0x12] sm:$0xff] }
  0x8d   : > { %v574_v40 = vld [vmem:[#allocation2 + $0x31] sm:$0xff] }
  0x8e   : > { %v582_v46 = vld [vmem:[#allocation2 + $0x32] sm:$0xff] }
  0x8f   : > { %v573_v36 = vld [vmem:[#allocation2 + $0x21] sm:$0xff]  ;;  %v430_v38 = vpop.permute.xlu0 %429  ;;  %v432_v39 = vpop.permute.xlu1 %431  ;;  %v2781_v61 = vld [vmem:[#allocation2 + $0x10] sm:$0xff]  ;;  %v2076_v34 = vld [vmem:[%s3231_s2 + $0x98] sm:$0xff] }
  0x90   : > { %598 = vrot.lane.b32.xlu1 %v573_v36, %s2472_s8  ;;  %628 = vrot.lane.b32.xlu0 %v580_v37, %s2473_s9  ;;  %448 = vst.msk [vmem:[#allocation2 + $0x71] sm:$0xff] %vm441_vm7, %v430_v38  ;;  %449 = vst.msk [vmem:[#allocation2 + $0x81] sm:$0xff] %vm441_vm7, %v432_v39  ;;  %v581_v41 = vld [vmem:[#allocation2 + $0x22] sm:$0xff]  ;;  %v2805_v13 = vld [vmem:[#allocation2 + $0x30] sm:$0xff] }
  0x91   : > { %v575_v42 = vld [vmem:[#allocation2 + $0x41] sm:$0xff] }
  0x92   : > { %v583_v48 = vld [vmem:[#allocation2 + $0x42] sm:$0xff] }
  0x93   : > { %v576_v47 = vld [vmem:[#allocation2 + $0x51] sm:$0xff]  ;;  %v577_v49 = vld [vmem:[#allocation2 + $0x61] sm:$0xff]  ;;  %v2775_v57 = vpop.permute.xlu0 %482  ;;  %v2779_v59 = vpop.permute.xlu1 %984 }
  0x94   : > { %630 = vrot.lane.b32.xlu1 %v581_v41, %s2473_s9  ;;  %600 = vrot.lane.b32.xlu0 %v574_v40, %s2472_s8  ;;  %v584_v50 = vld [vmem:[#allocation2 + $0x52] sm:$0xff]  ;;  %v585_v52 = vld [vmem:[#allocation2 + $0x62] sm:$0xff] }
  0x95   : > { %v2793_v5 = vld [vmem:[#allocation2 + $0x20] sm:$0xff]  ;;  %v2824_v27 = vld [vmem:[#allocation2 + $0x50] sm:$0xff] }
  0x96   : > { %v2818_v21 = vld [vmem:[#allocation2 + $0x40] sm:$0xff] }
  0x97   : > { %v578_v51 = vld [vmem:[#allocation2 + $0x71] sm:$0xff]  ;;  %v579_v53 = vld [vmem:[#allocation2 + $0x81] sm:$0xff]  ;;  %v2777_v58 = vpop.permute.xlu0 %514 }
  0x98   : > { %602 = vrot.lane.b32.xlu1 %v575_v42, %s2472_s8  ;;  %632 = vrot.lane.b32.xlu0 %v582_v46, %s2473_s9  ;;  %v586_v54 = vld [vmem:[#allocation2 + $0x72] sm:$0xff]  ;;  %v587_v55 = vld [vmem:[#allocation2 + $0x82] sm:$0xff] }
  0x99   : > { %v2839_v35 = vld [vmem:[#allocation2 + $0x60] sm:$0xff] }
  0x9c   : > { %634 = vrot.lane.b32.xlu1 %v583_v48, %s2473_s9  ;;  %604 = vrot.lane.b32.xlu0 %v576_v47, %s2472_s8 }
  0xa0   : > { %606 = vrot.lane.b32.xlu1 %v577_v49, %s2472_s8  ;;  %636 = vrot.lane.b32.xlu0 %v584_v50, %s2473_s9 }
  0xa4   : > { %638 = vrot.lane.b32.xlu1 %v585_v52, %s2473_s9  ;;  %608 = vrot.lane.b32.xlu0 %v578_v51, %s2472_s8 }
  0xa8   : > { %610 = vrot.lane.b32.xlu1 %v579_v53, %s2472_s8  ;;  %640 = vrot.lane.b32.xlu0 %v586_v54, %s2473_s9 }
  0xac   : > { %642 = vrot.lane.b32.xlu1 %v587_v55, %s2473_s9  ;;  %486 = vrot.lane.b32.xlu0 %v573_v36, %s2472_s8 }
  0xb0   : > { %518 = vrot.lane.b32.xlu0 %v581_v41, %s2473_s9  ;;  %484 = vrot.lane.b32.xlu1 %v572_v33, %s2472_s8  ;;  %v2075_v33 = vld [vmem:[%s3231_s2 + $0x90] sm:$0xff] }
  0xb1   : > { %v2389_v39 = vpack.c.bf16 %v2076_v34, %v2075_v33 }
  0xb4   : > { %490 = vrot.lane.b32.xlu0 %v575_v42, %s2472_s8  ;;  %516 = vrot.lane.b32.xlu1 %v580_v37, %s2473_s9 }
  0xb8   : > { %522 = vrot.lane.b32.xlu0 %v583_v48, %s2473_s9  ;;  %488 = vrot.lane.b32.xlu1 %v574_v40, %s2472_s8 }
  0xbc   : > { %494 = vrot.lane.b32.xlu0 %v577_v49, %s2472_s8  ;;  %520 = vrot.lane.b32.xlu1 %v582_v46, %s2473_s9 }
  0xc0   : > { %526 = vrot.lane.b32.xlu0 %v585_v52, %s2473_s9  ;;  %492 = vrot.lane.b32.xlu1 %v576_v47, %s2472_s8 }
  0xc4   : > { %970 = vrot.lane.b32.xlu0 %v573_v36, %s2472_s8  ;;  %524 = vrot.lane.b32.xlu1 %v584_v50, %s2473_s9 }
  0xc8   : > { %1002 = vrot.lane.b32.xlu0 %v581_v41, %s2473_s9  ;;  %496 = vrot.lane.b32.xlu1 %v578_v51, %s2472_s8  ;;  %v2845_v41 = vld [vmem:[#allocation2 + $0x70] sm:$0xff] }
  0xcc   : > { %974 = vrot.lane.b32.xlu0 %v575_v42, %s2472_s8  ;;  %528 = vrot.lane.b32.xlu1 %v586_v54, %s2473_s9  ;;  %v450_v42 = vld [vmem:[#allocation2] sm:$0xff] }
  0xd0   : > { %1006 = vrot.lane.b32.xlu0 %v583_v48, %s2473_s9  ;;  %972 = vrot.lane.b32.xlu1 %v574_v40, %s2472_s8  ;;  %v2853_v48 = vld [vmem:[#allocation2 + $0x80] sm:$0xff] }
  0xd4   : > { %978 = vrot.lane.b32.xlu0 %v577_v49, %s2472_s8  ;;  %1004 = vrot.lane.b32.xlu1 %v582_v46, %s2473_s9 }
  0xd8   : > { %1010 = vrot.lane.b32.xlu0 %v585_v52, %s2473_s9  ;;  %976 = vrot.lane.b32.xlu1 %v576_v47, %s2472_s8  ;;  %v538_v47 = vsel %vm272_vm0, %v450_v42, %v2775_v57  ;;  %v2078_v57 = vld [vmem:[%s3231_s2 + $0xa8] sm:$0xff] }
  0xdc   : > { %982 = vrot.lane.b32.xlu0 %v579_v53, %s2472_s8  ;;  %1008 = vrot.lane.b32.xlu1 %v584_v50, %s2473_s9  ;;  %v547_v53 = vsel %vm546_vm9, %v538_v47, %v2777_v58 }
  0xe0   : > { %1014 = vrot.lane.b32.xlu0 %v587_v55, %s2473_s9  ;;  %980 = vrot.lane.b32.xlu1 %v578_v51, %s2472_s8 }
  0xe4   : > { %1012 = vrot.lane.b32.xlu1 %v586_v54, %s2473_s9 }
  0xe8   : > { %1016 = vrot.lane.b32.xlu1 %v961_v56, %s2473_s9  ;;  %v2077_v56 = vld [vmem:[%s3231_s2 + $0xa0] sm:$0xff] }
  0xe9   : > { %v2393_v58 = vpack.c.bf16 %v2078_v57, %v2077_v56 }
  0xfe   : > { %v597_v60 = vpop.permute.xlu0 %596 }
  0xff   : > { %v652_v62 = vsel %vm272_vm0, %v2781_v61, %v597_v60 }
 0x102   : > { %v599_v63 = vpop.permute.xlu1 %598  ;;  %v629_v1 = vpop.permute.xlu0 %628 }
 0x103   : > { %v660_v2 = vsel %vm546_vm9, %v652_v62, %v629_v1  ;;  %v653_v6 = vsel %vm272_vm0, %v2793_v5, %v599_v63 }
 0x104   : > { %2231 = vmatprep.mubr.msk.f32.mxu0 %vm678_vm10, %v660_v2 }
 0x106   : > { %v631_v7 = vpop.permute.xlu1 %630  ;;  %v601_v8 = vpop.permute.xlu0 %600 }
 0x107   : > { %v661_v10 = vsel %vm546_vm9, %v653_v6, %v631_v7  ;;  %v654_v14 = vsel %vm272_vm0, %v2805_v13, %v601_v8  ;;  %v2397_v8 = vpack.c.bf16 %v2080_v4, %v2079_v3 }
 0x108   : > { %2232 = vmatmul.mubr.msk.f32.vlgmr.msra.gmra.mrb[0].mxu0 %vm678_vm10, %v661_v10  ;;  %v2082_v10 = vld [vmem:[%s3231_s2 + $0xc8] sm:$0xff] }
 0x109   : > { %2376 = vmatpush3.bf16.msra.mxu0 %v2728_v45 }
 0x10a   : > { %v603_v15 = vpop.permute.xlu1 %602  ;;  %v633_v16 = vpop.permute.xlu0 %632  ;;  %2378 = vmatprep.subr.bf16.mxu0 %v2377_v9 }
 0x10b   : > { %v662_v18 = vsel %vm546_vm9, %v654_v14, %v633_v16  ;;  %v655_v22 = vsel %vm272_vm0, %v2818_v21, %v603_v15 }
 0x10c   : > { %2234 = vmatprep.mubr.msk.f32.mxu0 %vm678_vm10, %v662_v18 }
 0x10d   : > { %2380 = vmatpush3.bf16.msra.mxu0 %v2377_v9  ;;  %v2081_v9 = vld [vmem:[%s3231_s2 + $0xc0] sm:$0xff] }
 0x10e   : > { %v635_v23 = vpop.permute.xlu1 %634  ;;  %v605_v24 = vpop.permute.xlu0 %604  ;;  %2382 = vmatprep.subr.bf16.mxu0 %v2381_v17  ;;  %v2401_v15 = vpack.c.bf16 %v2082_v10, %v2081_v9 }
 0x10f   : > { %v663_v26 = vsel %vm546_vm9, %v655_v22, %v635_v23  ;;  %v656_v28 = vsel %vm272_vm0, %v2824_v27, %v605_v24  ;;  %v2083_v22 = vld [vmem:[%s3231_s2 + $0xd0] sm:$0xff] }
 0x110   : > { %2235 = vmatmul.mubr.msk.f32.gmra.mrb[2].mxu0 %vm678_vm10, %v663_v26 }
 0x111   : > { %2384 = vmatpush3.bf16.msra.mxu0 %v2381_v17 }
 0x112   : > { %v607_v29 = vpop.permute.xlu1 %606  ;;  %v637_v30 = vpop.permute.xlu0 %636  ;;  %2386 = vmatprep.subr.bf16.mxu0 %v2385_v25 }
 0x113   : > { %v664_v31 = vsel %vm546_vm9, %v656_v28, %v637_v30  ;;  %v657_v36 = vsel %vm272_vm0, %v2839_v35, %v607_v29 }
 0x114   : > { %2237 = vmatprep.mubr.msk.f32.mxu0 %vm678_vm10, %v664_v31 }
 0x115   : > { %2388 = vmatpush3.bf16.msra.mxu0 %v2385_v25 }
 0x116   : > { %v639_v37 = vpop.permute.xlu1 %638  ;;  %v609_v38 = vpop.permute.xlu0 %608  ;;  %2259 = vmatprep.subr.mxu0 %v563_v32 }
 0x117   : > { %v665_v40 = vsel %vm546_vm9, %v657_v36, %v639_v37  ;;  %v658_v43 = vsel %vm272_vm0, %v2845_v41, %v609_v38 }
 0x118   : > { %2238 = vmatmul.mubr.msk.f32.gmra.mrb[4].mxu0 %vm678_vm10, %v665_v40 }
 0x119   : > { %2260 = vmatpush3.msra.mxu0 %v563_v32 }
 0x11a   : > { %v611_v44 = vpop.permute.xlu1 %610  ;;  %v641_v45 = vpop.permute.xlu0 %640  ;;  %2390 = vmatprep.subr.bf16.mxu0 %v2389_v39 }
 0x11b   : > { %v666_v46 = vsel %vm546_vm9, %v658_v43, %v641_v45  ;;  %v659_v49 = vsel %vm272_vm0, %v2853_v48, %v611_v44 }
 0x11c   : > { %2240 = vmatprep.mubr.msk.f32.mxu0 %vm678_vm10, %v666_v46 }
 0x11e   : > { %v643_v50 = vpop.permute.xlu1 %642  ;;  %v487_v51 = vpop.permute.xlu0 %486 }
 0x11f   : > { %v667_v52 = vsel %vm546_vm9, %v659_v49, %v643_v50  ;;  %v540_v1 = vsel %vm272_vm0, %v2793_v5, %v487_v51 }
 0x120   : > { %2241 = vmatmul.mubr.msk.f32.gmra.mrb[6].mxu0 %vm678_vm10, %v667_v52 }
 0x121   : > { %2261 = vmatprep.mubr.msk.f32.mxu0 %vm678_vm10, %v547_v53 }
 0x122   : > { %v519_v54 = vpop.permute.xlu0 %518  ;;  %v485_v55 = vpop.permute.xlu1 %484 }
 0x123   : > { %v539_v60 = vsel %vm272_vm0, %v2781_v61, %v485_v55  ;;  %v549_v6 = vsel %vm546_vm9, %v540_v1, %v519_v54 }
 0x126   : > { %v491_v62 = vpop.permute.xlu0 %490  ;;  %v517_v63 = vpop.permute.xlu1 %516 }
 0x127   : > { %v548_v2 = vsel %vm546_vm9, %v539_v60, %v517_v63  ;;  %v542_v16 = vsel %vm272_vm0, %v2818_v21, %v491_v62 }
 0x128   : > { %2262 = vmatmul.mubr.msk.f32.vlgmr.msra.gmra.mrb[0].mxu0 %vm678_vm10, %v548_v2 }
 0x129   : > { %2264 = vmatprep.mubr.msk.f32.mxu0 %vm678_vm10, %v549_v6  ;;  %2392 = vmatpush3.bf16.msra.mxu0 %v2389_v39 }
 0x12a   : > { %v523_v61 = vpop.permute.xlu0 %522  ;;  %v489_v7 = vpop.permute.xlu1 %488  ;;  %2394 = vmatprep.subr.bf16.mxu0 %v2393_v58 }
 0x12b   : > { %v541_v11 = vsel %vm272_vm0, %v2805_v13, %v489_v7  ;;  %v551_v18 = vsel %vm546_vm9, %v542_v16, %v523_v61  ;;  %v2095_v16 = vld [vmem:[%s3233_s4 + $0x28] sm:$0xff] }
 0x12d   : > { %2396 = vmatpush3.bf16.msra.mxu0 %v2393_v58 }
 0x12e   : > { %v495_v12 = vpop.permute.xlu0 %494  ;;  %v521_v14 = vpop.permute.xlu1 %520  ;;  %2398 = vmatprep.subr.bf16.mxu0 %v2397_v8 }
 0x12f   : > { %v550_v17 = vsel %vm546_vm9, %v541_v11, %v521_v14  ;;  %v544_v26 = vsel %vm272_vm0, %v2839_v35, %v495_v12 }
 0x130   : > { %2265 = vmatmul.mubr.msk.f32.gmra.mrb[2].mxu0 %vm678_vm10, %v550_v17 }
 0x131   : > { %2267 = vmatprep.mubr.msk.f32.mxu0 %vm678_vm10, %v551_v18  ;;  %2400 = vmatpush3.bf16.msra.mxu0 %v2397_v8  ;;  %v2094_v8 = vld [vmem:[%s3233_s4 + $0x20] sm:$0xff] }
 0x132   : > { %v527_v19 = vpop.permute.xlu0 %526  ;;  %v493_v20 = vpop.permute.xlu1 %492  ;;  %2402 = vmatprep.subr.bf16.mxu0 %v2401_v15  ;;  %v2405_v9 = vpack.c.bf16 %v2094_v8, %v2093_v0 }
 0x133   : > { %v543_v23 = vsel %vm272_vm0, %v2824_v27, %v493_v20  ;;  %v553_v29 = vsel %vm546_vm9, %v544_v26, %v527_v19 }
 0x134   : > { %2406 = vmatprep.subr.bf16.mxu1 %v2405_v9 }
 0x135   : > { %2404 = vmatpush3.bf16.msra.mxu0 %v2401_v15  ;;  %2408 = vmatpush3.bf16.msra.mxu1 %v2405_v9 }
 0x136   : > { %v971_v24 = vpop.permute.xlu0 %970  ;;  %v525_v25 = vpop.permute.xlu1 %524  ;;  %2289 = vmatprep.subr.mxu0 %v2083_v22  ;;  %2307 = vmatprep.subr.mxu1 %v2095_v16 }
 0x137   : > { %v552_v28 = vsel %vm546_vm9, %v543_v23, %v525_v25  ;;  %v1026_v36 = vsel %vm272_vm0, %v2793_v5, %v971_v24 }
 0x138   : > { %2268 = vmatmul.mubr.msk.f32.gmra.mrb[4].mxu0 %vm678_vm10, %v552_v28 }
 0x139   : > { %2270 = vmatprep.mubr.msk.f32.mxu0 %vm678_vm10, %v553_v29  ;;  %2290 = vmatpush3.msra.mxu0 %v2083_v22 }
 0x13a   : > { %v1003_v30 = vpop.permute.xlu0 %1002  ;;  %v497_v31 = vpop.permute.xlu1 %496  ;;  %2308 = vmatpush3.msra.mxu1 %v2095_v16 }
 0x13b   : > { %v545_v32 = vsel %vm272_vm0, %v2845_v41, %v497_v31  ;;  %v1034_v38 = vsel %vm546_vm9, %v1026_v36, %v1003_v30 }
 0x13e   : > { %v975_v33 = vpop.permute.xlu0 %974  ;;  %v529_v34 = vpop.permute.xlu1 %528 }
 0x13f   : > { %v554_v37 = vsel %vm546_vm9, %v545_v32, %v529_v34  ;;  %v1028_v45 = vsel %vm272_vm0, %v2818_v21, %v975_v33 }
 0x140   : > { %2271 = vmatmul.mubr.msk.f32.gmra.mrb[6].mxu0 %vm678_vm10, %v554_v37 }
 0x141   : > { %2291 = vmatprep.mubr.msk.f32.mxu0 %vm678_vm10, %v1034_v38 }
 0x142   : > { %v1007_v39 = vpop.permute.xlu0 %1006  ;;  %v973_v40 = vpop.permute.xlu1 %972 }
 0x143   : > { %v1027_v42 = vsel %vm272_vm0, %v2805_v13, %v973_v40  ;;  %v1036_v46 = vsel %vm546_vm9, %v1028_v45, %v1007_v39  ;;  %v1327_v45 = vld [vmem:[%s3233_s4 + $0x8] sm:$0xff] }
 0x146   : > { %v979_v43 = vpop.permute.xlu0 %978  ;;  %v1005_v44 = vpop.permute.xlu1 %1004 }
 0x147   : > { %v1035_v5 = vsel %vm546_vm9, %v1027_v42, %v1005_v44  ;;  %v1030_v13 = vsel %vm272_vm0, %v2839_v35, %v979_v43  ;;  %v1326_v44 = vld [vmem:[%s3233_s4] sm:$0xff] }
 0x148   : > { %2292 = vmatmul.mubr.msk.f32.vlgmr.msra.gmra.mrb[0].mxu0 %vm678_vm10, %v1035_v5  ;;  %v2409_v5 = vpack.c.bf16 %v1327_v45, %v1326_v44 }
 0x149   : > { %2294 = vmatprep.mubr.msk.f32.mxu0 %vm678_vm10, %v1036_v46 }
 0x14a   : > { %v1011_v47 = vpop.permute.xlu0 %1010  ;;  %v977_v49 = vpop.permute.xlu1 %976  ;;  %2410 = vmatprep.subr.bf16.mxu1 %v2409_v5 }
 0x14b   : > { %v1029_v50 = vsel %vm272_vm0, %v2824_v27, %v977_v49  ;;  %v1038_v53 = vsel %vm546_vm9, %v1030_v13, %v1011_v47  ;;  %v945_v27 = vld [vmem:[#allocation2 + $0x90] sm:$0xff] }
 0x14c   : > { %v1033_v63 = vsel %vm272_vm0, %v945_v27, %v2779_v59  ;;  %v1229_v59 = vld [vmem:[#allocation3 + $0x1] sm:$0xff] }
 0x14d   : > { %1253 = vrot.lane.b32.xlu0 %v1229_v59, %s2474_s27 }
 0x14e   : > { %v1009_v51 = vpop.permute.xlu1 %1008  ;;  %v983_v52 = vpop.permute.xlu0 %982 }
 0x14f   : > { %v1037_v21 = vsel %vm546_vm9, %v1029_v50, %v1009_v51  ;;  %v1032_v60 = vsel %vm272_vm0, %v2853_v48, %v983_v52  ;;  %v2092_v48 = vld [vmem:[%s3232_s3] ss:$0 sm:$0xff]  ;;  %v1711_v52 = vld [vmem:[#allocation3 + $0x91] sm:$0xff] }
 0x150   : > { %2295 = vmatmul.mubr.msk.f32.gmra.mrb[2].mxu0 %vm678_vm10, %v1037_v21  ;;  %v1719_v21 = vld [vmem:[#allocation3 + $0x92] sm:$0xff] }
 0x151   : > { %2297 = vmatprep.mubr.msk.f32.mxu0 %vm678_vm10, %v1038_v53 }
 0x152   : > { %v981_v54 = vpop.permute.xlu1 %980  ;;  %v1015_v55 = vpop.permute.xlu0 %1014 }
 0x153   : > { %v1031_v56 = vsel %vm272_vm0, %v2845_v41, %v981_v54  ;;  %v1040_v62 = vsel %vm546_vm9, %v1032_v60, %v1015_v55  ;;  %v1237_v41 = vld [vmem:[#allocation3 + $0x2] sm:$0xff] }
 0x154   : > { %1285 = vrot.lane.b32.xlu0 %v1237_v41, %s2471_s7 }
 0x156   : > { %v1013_v57 = vpop.permute.xlu1 %1012 }
 0x157   : > { %v1039_v35 = vsel %vm546_vm9, %v1031_v56, %v1013_v57 }
 0x158   : > { %2298 = vmatmul.mubr.msk.f32.gmra.mrb[4].mxu0 %vm678_vm10, %v1039_v35 }
 0x159   : > { %2300 = vmatprep.mubr.msk.f32.mxu0 %vm678_vm10, %v1040_v62 }
 0x15a   : > { %v1017_v58 = vpop.permute.xlu1 %1016 }
 0x15b   : > { %v1041_v1 = vsel %vm546_vm9, %v1033_v63, %v1017_v58 }
 0x15c   : > { %2301 = vmatmul.mubr.msk.f32.gmra.mrb[6].mxu0 %vm678_vm10, %v1041_v1 }
 0x1bf   : > { %v3064_v53 = vpop.permute.xlu0 %1253 }
 0x1c6   : > { %v3066_v54 = vpop.permute.xlu0 %1285 }
 0x21b   : > { %v2293_v2 = vpop.f32.mrb[0].mxu0 }
 0x21c   : > { %v1197_v3 = vadd.f32 %v2293_v2, %v2092_v48  ;;  %v1142_v4 = vpop.f32.mrb[1].mxu0 }
 0x21d   : > { %v1196_v6 = vadd.f32 %v2092_v48, %v1142_v4  ;;  %v2112_v4 = vld [vmem:[%s3233_s4 + $0x30] sm:$0xff] }
 0x21e   : > { %v1205_v61 = vmax.f32 %v1197_v3, 0.0  ;;  %v1328_v3 = vld [vmem:[%s3233_s4 + $0x10] sm:$0xff] }
 0x21f   : > { %v1204_v7 = vmax.f32 %v1196_v6, 0.0  ;;  %v2113_v6 = vld [vmem:[%s3233_s4 + $0x38] sm:$0xff] }
 0x220   : > { %1214 = vst.msk [vmem:[#allocation3 + $0x21] sm:$0xff] %vm300_vm8, %v1205_v61  ;;  %v2413_v0 = vpack.c.bf16 %v2113_v6, %v2112_v4 }
 0x221   : > { %1213 = vst.msk [vmem:[#allocation3 + $0x11] sm:$0xff] %vm300_vm8, %v1204_v7 }
 0x223   : > { %v2296_v10 = vpop.f32.mrb[2].mxu0 }
 0x224   : > { %v1199_v11 = vadd.f32 %v2296_v10, %v2092_v48  ;;  %v1152_v12 = vpop.f32.mrb[3].mxu0 }
 0x225   : > { %v1198_v14 = vadd.f32 %v2092_v48, %v1152_v12 }
 0x226   : > { %v1207_v15 = vmax.f32 %v1199_v11, 0.0 }
 0x227   : > { %v1206_v17 = vmax.f32 %v1198_v14, 0.0  ;;  %v3001_v18 = vld [vmem:[#allocation3 + $0x21] sm:$0xff] }
 0x228   : > { %1216 = vst.msk [vmem:[#allocation3 + $0x41] sm:$0xff] %vm300_vm8, %v1207_v15  ;;  %1363 = vrot.lane.b32.xlu1 %v3001_v18, %s2474_s27  ;;  %1257 = vrot.lane.b32.xlu0 %v3001_v18, %s2474_s27  ;;  %v1346_v20 = vld [vmem:[#allocation3 + $0x22] sm:$0xff]  ;;  %v1337_v29 = vld [vmem:[#allocation3 + $0x11] sm:$0xff] }
 0x229   : > { %1215 = vst.msk [vmem:[#allocation3 + $0x31] sm:$0xff] %vm300_vm8, %v1206_v17  ;;  %v1345_v36 = vld [vmem:[#allocation3 + $0x12] sm:$0xff]  ;;  %v3076_v63 = vld [vmem:[#allocation3 + $0x20] sm:$0xff] }
 0x22a   : > { %v3074_v62 = vld [vmem:[#allocation3 + $0x10] sm:$0xff] }
 0x22b   : > { %v2299_v19 = vpop.f32.mrb[4].mxu0 }
 0x22c   : > { %v1201_v22 = vadd.f32 %v2299_v19, %v2092_v48  ;;  %1395 = vrot.lane.b32.xlu1 %v1346_v20, %s2471_s7  ;;  %1289 = vrot.lane.b32.xlu0 %v1346_v20, %s2471_s7  ;;  %v1162_v23 = vpop.f32.mrb[5].mxu0 }
 0x22d   : > { %v1200_v24 = vadd.f32 %v2092_v48, %v1162_v23 }
 0x22e   : > { %v1209_v25 = vmax.f32 %v1201_v22, 0.0 }
 0x22f   : > { %v1208_v26 = vmax.f32 %v1200_v24, 0.0  ;;  %v2302_v28 = vpop.f32.mrb[6].mxu0  ;;  %v1340_v37 = vld [vmem:[#allocation3 + $0x41] sm:$0xff] }
 0x230   : > { %1218 = vst.msk [vmem:[#allocation3 + $0x61] sm:$0xff] %vm300_vm8, %v1209_v25  ;;  %v1203_v30 = vadd.f32 %v2302_v28, %v2092_v48  ;;  %1361 = vrot.lane.b32.xlu0 %v1337_v29, %s2474_s27  ;;  %1255 = vrot.lane.b32.xlu1 %v1337_v29, %s2474_s27  ;;  %v1172_v31 = vpop.f32.mrb[7].mxu0  ;;  %v1348_v38 = vld [vmem:[#allocation3 + $0x42] sm:$0xff]  ;;  %v1339_v39 = vld [vmem:[#allocation3 + $0x31] sm:$0xff] }
 0x231   : > { %1217 = vst.msk [vmem:[#allocation3 + $0x51] sm:$0xff] %vm300_vm8, %v1208_v26  ;;  %v1202_v32 = vadd.f32 %v2092_v48, %v1172_v31  ;;  %v1347_v40 = vld [vmem:[#allocation3 + $0x32] sm:$0xff]  ;;  %v3103_v14 = vld [vmem:[#allocation3 + $0x40] sm:$0xff] }
 0x232   : > { %v1211_v33 = vmax.f32 %v1203_v30, 0.0  ;;  %v3101_v12 = vld [vmem:[#allocation3 + $0x30] sm:$0xff] }
 0x233   : > { %v1210_v34 = vmax.f32 %v1202_v32, 0.0 }
 0x234   : > { %1220 = vst.msk [vmem:[#allocation3 + $0x81] sm:$0xff] %vm300_vm8, %v1211_v33  ;;  %1393 = vrot.lane.b32.xlu0 %v1345_v36, %s2471_s7  ;;  %1287 = vrot.lane.b32.xlu1 %v1345_v36, %s2471_s7 }
 0x235   : > { %1219 = vst.msk [vmem:[#allocation3 + $0x71] sm:$0xff] %vm300_vm8, %v1210_v34 }
 0x237   : > { %v1342_v42 = vld [vmem:[#allocation3 + $0x61] sm:$0xff] }
 0x238   : > { %1367 = vrot.lane.b32.xlu1 %v1340_v37, %s2474_s27  ;;  %1261 = vrot.lane.b32.xlu0 %v1340_v37, %s2474_s27  ;;  %v1350_v43 = vld [vmem:[#allocation3 + $0x62] sm:$0xff]  ;;  %v1341_v46 = vld [vmem:[#allocation3 + $0x51] sm:$0xff] }
 0x239   : > { %v1349_v47 = vld [vmem:[#allocation3 + $0x52] sm:$0xff]  ;;  %v3115_v30 = vld [vmem:[#allocation3 + $0x60] sm:$0xff] }
 0x23a   : > { %v3113_v29 = vld [vmem:[#allocation3 + $0x50] sm:$0xff] }
 0x23b   : > { %v1344_v49 = vld [vmem:[#allocation3 + $0x81] sm:$0xff] }
 0x23c   : > { %1399 = vrot.lane.b32.xlu1 %v1348_v38, %s2471_s7  ;;  %1293 = vrot.lane.b32.xlu0 %v1348_v38, %s2471_s7  ;;  %v1343_v50 = vld [vmem:[#allocation3 + $0x71] sm:$0xff]  ;;  %v1352_v51 = vld [vmem:[#allocation3 + $0x82] sm:$0xff] }
 0x23d   : > { %v1351_v13 = vld [vmem:[#allocation3 + $0x72] sm:$0xff] }
 0x240   : > { %1365 = vrot.lane.b32.xlu0 %v1339_v39, %s2474_s27  ;;  %1259 = vrot.lane.b32.xlu1 %v1339_v39, %s2474_s27 }
 0x244   : > { %1397 = vrot.lane.b32.xlu0 %v1347_v40, %s2471_s7  ;;  %1291 = vrot.lane.b32.xlu1 %v1347_v40, %s2471_s7 }
 0x248   : > { %1371 = vrot.lane.b32.xlu1 %v1342_v42, %s2474_s27  ;;  %1265 = vrot.lane.b32.xlu0 %v1342_v42, %s2474_s27 }
 0x24c   : > { %1403 = vrot.lane.b32.xlu1 %v1350_v43, %s2471_s7  ;;  %1297 = vrot.lane.b32.xlu0 %v1350_v43, %s2471_s7 }
 0x250   : > { %1369 = vrot.lane.b32.xlu0 %v1341_v46, %s2474_s27  ;;  %1263 = vrot.lane.b32.xlu1 %v1341_v46, %s2474_s27 }
 0x254   : > { %1401 = vrot.lane.b32.xlu0 %v1349_v47, %s2471_s7  ;;  %1295 = vrot.lane.b32.xlu1 %v1349_v47, %s2471_s7 }
 0x258   : > { %1375 = vrot.lane.b32.xlu1 %v1344_v49, %s2474_s27  ;;  %1373 = vrot.lane.b32.xlu0 %v1343_v50, %s2474_s27 }
 0x25c   : > { %1407 = vrot.lane.b32.xlu1 %v1352_v51, %s2471_s7  ;;  %1405 = vrot.lane.b32.xlu0 %v1351_v13, %s2471_s7 }
 0x260   : > { %1730 = vrot.lane.b32.xlu1 %v1339_v39, %s2474_s27  ;;  %1728 = vrot.lane.b32.xlu0 %v3001_v18, %s2474_s27 }
 0x264   : > { %1762 = vrot.lane.b32.xlu1 %v1347_v40, %s2471_s7  ;;  %1760 = vrot.lane.b32.xlu0 %v1346_v20, %s2471_s7  ;;  %v1221_v40 = vld [vmem:[#allocation3] sm:$0xff] }
 0x265   : > { %v1309_v44 = vsel %vm300_vm8, %v1221_v40, %v3064_v53 }
 0x268   : > { %1734 = vrot.lane.b32.xlu1 %v1341_v46, %s2474_s27  ;;  %1732 = vrot.lane.b32.xlu0 %v1340_v37, %s2474_s27 }
 0x26c   : > { %1766 = vrot.lane.b32.xlu1 %v1349_v47, %s2471_s7  ;;  %1764 = vrot.lane.b32.xlu0 %v1348_v38, %s2471_s7 }
 0x270   : > { %1736 = vrot.lane.b32.xlu0 %v1342_v42, %s2474_s27  ;;  %1267 = vrot.lane.b32.xlu1 %v1343_v50, %s2474_s27  ;;  %v3125_v42 = vld [vmem:[#allocation3 + $0x80] sm:$0xff] }
 0x274   : > { %1768 = vrot.lane.b32.xlu0 %v1350_v43, %s2471_s7  ;;  %1299 = vrot.lane.b32.xlu1 %v1351_v13, %s2471_s7  ;;  %v3127_v43 = vld [vmem:[#allocation3 + $0x70] sm:$0xff] }
 0x278   : > { %1740 = vrot.lane.b32.xlu0 %v1344_v49, %s2474_s27  ;;  %1742 = vrot.lane.b32.xlu1 %v1711_v52, %s2474_s27 }
 0x27c   : > { %1772 = vrot.lane.b32.xlu0 %v1352_v51, %s2471_s7  ;;  %1738 = vrot.lane.b32.xlu1 %v1343_v50, %s2474_s27  ;;  %v1318_v51 = vsel %vm1317_vm13, %v1309_v44, %v3066_v54  ;;  %v2114_v54 = vld [vmem:[%s3233_s4 + $0x40] sm:$0xff] }
 0x280   : > { %1770 = vrot.lane.b32.xlu1 %v1351_v13, %s2471_s7 }
 0x284   : > { %1774 = vrot.lane.b32.xlu1 %v1719_v21, %s2471_s7 }
 0x29a   : > { %v1364_v55 = vpop.permute.xlu1 %1363  ;;  %v3068_v56 = vpop.permute.xlu0 %1257 }
 0x29b   : > { %v1418_v41 = vsel %vm300_vm8, %v3076_v63, %v1364_v55  ;;  %v1311_v53 = vsel %vm300_vm8, %v3076_v63, %v3068_v56 }
 0x29e   : > { %v1396_v57 = vpop.permute.xlu1 %1395  ;;  %v3070_v27 = vpop.permute.xlu0 %1289 }
 0x29f   : > { %v1426_v2 = vsel %vm1317_vm13, %v1418_v41, %v1396_v57  ;;  %v1320_v57 = vsel %vm1317_vm13, %v1311_v53, %v3070_v27 }
 0x2a2   : > { %v1362_v60 = vpop.permute.xlu0 %1361  ;;  %v3072_v35 = vpop.permute.xlu1 %1255 }
 0x2a3   : > { %v1417_v58 = vsel %vm300_vm8, %v3074_v62, %v1362_v60  ;;  %v1310_v21 = vsel %vm300_vm8, %v3074_v62, %v3072_v35 }
 0x2a6   : > { %v1394_v1 = vpop.permute.xlu0 %1393  ;;  %v3080_v59 = vpop.permute.xlu1 %1287 }
 0x2a7   : > { %v1425_v48 = vsel %vm1317_vm13, %v1417_v58, %v1394_v1  ;;  %v1319_v55 = vsel %vm1317_vm13, %v1310_v21, %v3080_v59 }
 0x2a8   : > { %2309 = vmatprep.mubr.msk.f32.mxu1 %vm272_vm0, %v1425_v48 }
 0x2a9   : > { %2310 = vmatmul.mubr.msk.f32.vlgmr.msra.gmra.mrb[0].mxu1 %vm272_vm0, %v1426_v2 }
 0x2aa   : > { %v1368_v61 = vpop.permute.xlu1 %1367  ;;  %v3097_v7 = vpop.permute.xlu0 %1261  ;;  %2412 = vmatpush3.bf16.msra.mxu1 %v2409_v5 }
 0x2ab   : > { %2325 = vmatprep.subr.mxu1 %v1328_v3  ;;  %v1420_v18 = vsel %vm300_vm8, %v3103_v14, %v1368_v61  ;;  %v1313_v35 = vsel %vm300_vm8, %v3103_v14, %v3097_v7 }
 0x2ae   : > { %v1400_v8 = vpop.permute.xlu1 %1399  ;;  %v3099_v9 = vpop.permute.xlu0 %1293  ;;  %2326 = vmatpush3.msra.mxu1 %v1328_v3 }
 0x2af   : > { %2414 = vmatprep.subr.bf16.mxu1 %v2413_v0  ;;  %v1428_v20 = vsel %vm1317_vm13, %v1420_v18, %v1400_v8  ;;  %v1322_v27 = vsel %vm1317_vm13, %v1313_v35, %v3099_v9 }
 0x2b2   : > { %v1366_v10 = vpop.permute.xlu0 %1365  ;;  %v1260_v11 = vpop.permute.xlu1 %1259 }
 0x2b3   : > { %v1419_v15 = vsel %vm300_vm8, %v3101_v12, %v1366_v10  ;;  %v1312_v56 = vsel %vm300_vm8, %v3101_v12, %v1260_v11 }
 0x2b6   : > { %v1398_v16 = vpop.permute.xlu0 %1397  ;;  %v1292_v17 = vpop.permute.xlu1 %1291 }
 0x2b7   : > { %v1427_v19 = vsel %vm1317_vm13, %v1419_v15, %v1398_v16  ;;  %v1321_v62 = vsel %vm1317_vm13, %v1312_v56, %v1292_v17 }
 0x2b8   : > { %2312 = vmatprep.mubr.msk.f32.mxu1 %vm272_vm0, %v1427_v19 }
 0x2b9   : > { %2313 = vmatmul.mubr.msk.f32.gmra.mrb[2].mxu1 %vm272_vm0, %v1428_v20 }
 0x2ba   : > { %v1372_v22 = vpop.permute.xlu1 %1371  ;;  %v1266_v23 = vpop.permute.xlu0 %1265 }
 0x2bb   : > { %v1422_v34 = vsel %vm300_vm8, %v3115_v30, %v1372_v22  ;;  %v1315_v48 = vsel %vm300_vm8, %v3115_v30, %v1266_v23 }
 0x2be   : > { %v1404_v24 = vpop.permute.xlu1 %1403  ;;  %v1298_v25 = vpop.permute.xlu0 %1297 }
 0x2bf   : > { %v1430_v37 = vsel %vm1317_vm13, %v1422_v34, %v1404_v24  ;;  %v1324_v3 = vsel %vm1317_vm13, %v1315_v48, %v1298_v25 }
 0x2c2   : > { %v1370_v26 = vpop.permute.xlu0 %1369  ;;  %v1264_v28 = vpop.permute.xlu1 %1263 }
 0x2c3   : > { %v1421_v31 = vsel %vm300_vm8, %v3113_v29, %v1370_v26  ;;  %v1314_v41 = vsel %vm300_vm8, %v3113_v29, %v1264_v28 }
 0x2c6   : > { %v1402_v32 = vpop.permute.xlu0 %1401  ;;  %v1296_v33 = vpop.permute.xlu1 %1295 }
 0x2c7   : > { %v1429_v36 = vsel %vm1317_vm13, %v1421_v31, %v1402_v32  ;;  %v1323_v2 = vsel %vm1317_vm13, %v1314_v41, %v1296_v33  ;;  %v1703_v31 = vld [vmem:[#allocation3 + $0x90] sm:$0xff] }
 0x2c8   : > { %2315 = vmatprep.mubr.msk.f32.mxu1 %vm272_vm0, %v1429_v36 }
 0x2c9   : > { %2316 = vmatmul.mubr.msk.f32.gmra.mrb[4].mxu1 %vm272_vm0, %v1430_v37  ;;  %v2123_v37 = vld [vmem:[%s3234_s5] ss:$0 sm:$0xff] }
 0x2ca   : > { %v1376_v38 = vpop.permute.xlu1 %1375  ;;  %v1374_v39 = vpop.permute.xlu0 %1373 }
 0x2cb   : > { %v1424_v45 = vsel %vm300_vm8, %v3125_v42, %v1376_v38  ;;  %v1423_v5 = vsel %vm300_vm8, %v3127_v43, %v1374_v39 }
 0x2ce   : > { %v1408_v46 = vpop.permute.xlu1 %1407  ;;  %v1406_v47 = vpop.permute.xlu0 %1405 }
 0x2cf   : > { %v1432_v49 = vsel %vm1317_vm13, %v1424_v45, %v1408_v46  ;;  %v1431_v50 = vsel %vm1317_vm13, %v1423_v5, %v1406_v47 }
 0x2d0   : > { %2318 = vmatprep.mubr.msk.f32.mxu1 %vm272_vm0, %v1431_v50 }
 0x2d1   : > { %2319 = vmatmul.mubr.msk.f32.gmra.mrb[6].mxu1 %vm272_vm0, %v1432_v49 }
 0x2d2   : > { %v1731_v13 = vpop.permute.xlu1 %1730  ;;  %v1729_v52 = vpop.permute.xlu0 %1728  ;;  %2327 = vmatprep.mubr.msk.f32.mxu1 %vm272_vm0, %v1318_v51 }
 0x2d3   : > { %v1784_v10 = vsel %vm300_vm8, %v3076_v63, %v1729_v52  ;;  %v1785_v16 = vsel %vm300_vm8, %v3101_v12, %v1731_v13 }
 0x2d5   : > { %2328 = vmatmul.mubr.msk.f32.vlgmr.msra.gmra.mrb[0].mxu1 %vm272_vm0, %v1319_v55 }
 0x2d6   : > { %v1763_v60 = vpop.permute.xlu1 %1762  ;;  %v1761_v58 = vpop.permute.xlu0 %1760  ;;  %2330 = vmatprep.mubr.msk.f32.mxu1 %vm272_vm0, %v1320_v57  ;;  %2416 = vmatpush3.bf16.msra.mxu1 %v2413_v0 }
 0x2d7   : > { %2343 = vmatprep.subr.mxu1 %v2114_v54  ;;  %v1792_v15 = vsel %vm1317_vm13, %v1784_v10, %v1761_v58  ;;  %v1793_v18 = vsel %vm1317_vm13, %v1785_v16, %v1763_v60 }
 0x2d9   : > { %2331 = vmatmul.mubr.msk.f32.gmra.mrb[2].mxu1 %vm272_vm0, %v1321_v62 }
 0x2da   : > { %v1735_v1 = vpop.permute.xlu1 %1734  ;;  %v1733_v59 = vpop.permute.xlu0 %1732  ;;  %2333 = vmatprep.mubr.msk.f32.mxu1 %vm272_vm0, %v1322_v27  ;;  %2344 = vmatpush3.msra.mxu1 %v2114_v54 }
 0x2db   : > { %v1786_v19 = vsel %vm300_vm8, %v3103_v14, %v1733_v59  ;;  %v1787_v22 = vsel %vm300_vm8, %v3113_v29, %v1735_v1 }
 0x2dd   : > { %2334 = vmatmul.mubr.msk.f32.gmra.mrb[4].mxu1 %vm272_vm0, %v1323_v2 }
 0x2de   : > { %v1767_v4 = vpop.permute.xlu1 %1766  ;;  %v1765_v6 = vpop.permute.xlu0 %1764  ;;  %2336 = vmatprep.mubr.msk.f32.mxu1 %vm272_vm0, %v1324_v3 }
 0x2df   : > { %v1794_v63 = vsel %vm1317_vm13, %v1786_v19, %v1765_v6  ;;  %v1795_v24 = vsel %vm1317_vm13, %v1787_v22, %v1767_v4 }
 0x2e2   : > { %v1737_v61 = vpop.permute.xlu0 %1736  ;;  %v1268_v7 = vpop.permute.xlu1 %1267 }
 0x2e3   : > { %v1316_v0 = vsel %vm300_vm8, %v3127_v43, %v1268_v7  ;;  %v1788_v12 = vsel %vm300_vm8, %v3115_v30, %v1737_v61 }
 0x2e6   : > { %v1769_v8 = vpop.permute.xlu0 %1768  ;;  %v1300_v9 = vpop.permute.xlu1 %1299 }
 0x2e7   : > { %v1325_v11 = vsel %vm1317_vm13, %v1316_v0, %v1300_v9  ;;  %v1796_v25 = vsel %vm1317_vm13, %v1788_v12, %v1769_v8 }
 0x2e8   : > { %2337 = vmatmul.mubr.msk.f32.gmra.mrb[6].mxu1 %vm272_vm0, %v1325_v11 }
 0x2e9   : > { %2345 = vmatprep.mubr.msk.f32.mxu1 %vm272_vm0, %v1792_v15 }
 0x2ea   : > { %v1743_v17 = vpop.permute.xlu1 %1742  ;;  %v1741_v20 = vpop.permute.xlu0 %1740 }
 0x2eb   : > { %v1790_v29 = vsel %vm300_vm8, %v3125_v42, %v1741_v20  ;;  %v1791_v33 = vsel %vm300_vm8, %v1703_v31, %v1743_v17 }
 0x2ec   : > { %2346 = vmatmul.mubr.msk.f32.vlgmr.msra.gmra.mrb[0].mxu1 %vm272_vm0, %v1793_v18 }
 0x2ed   : > { %2348 = vmatprep.mubr.msk.f32.mxu1 %vm272_vm0, %v1794_v63 }
 0x2ee   : > { %v1739_v23 = vpop.permute.xlu1 %1738  ;;  %v1773_v14 = vpop.permute.xlu0 %1772 }
 0x2ef   : > { %v1789_v26 = vsel %vm300_vm8, %v3127_v43, %v1739_v23  ;;  %v1798_v30 = vsel %vm1317_vm13, %v1790_v29, %v1773_v14 }
 0x2f0   : > { %2349 = vmatmul.mubr.msk.f32.gmra.mrb[2].mxu1 %vm272_vm0, %v1795_v24 }
 0x2f1   : > { %2351 = vmatprep.mubr.msk.f32.mxu1 %vm272_vm0, %v1796_v25 }
 0x2f2   : > { %v1771_v28 = vpop.permute.xlu1 %1770 }
 0x2f3   : > { %v1797_v32 = vsel %vm1317_vm13, %v1789_v26, %v1771_v28 }
 0x2f4   : > { %2352 = vmatmul.mubr.msk.f32.gmra.mrb[4].mxu1 %vm272_vm0, %v1797_v32 }
 0x2f5   : > { %2354 = vmatprep.mubr.msk.f32.mxu1 %vm272_vm0, %v1798_v30 }
 0x2f6   : > { %v1775_v34 = vpop.permute.xlu1 %1774 }
 0x2f7   : > { %v1799_v36 = vsel %vm1317_vm13, %v1791_v33, %v1775_v34 }
 0x2f8   : > { %2355 = vmatmul.mubr.msk.f32.gmra.mrb[6].mxu1 %vm272_vm0, %v1799_v36 }
 0x3bf   : > { %v2347_v38 = vpop.f32.mrb[0].mxu1 }
 0x3c0   : > { %v1949_v39 = vadd.f32 %v2347_v38, %v2123_v37  ;;  %v1894_v40 = vpop.f32.mrb[1].mxu1 }
 0x3c1   : > { %v1948_v42 = vadd.f32 %v2123_v37, %v1894_v40 }
 0x3c2   : > { %v1957_v43 = vmax.f32 %v1949_v39, 0.0 }
 0x3c3   : > { %v1956_v44 = vmax.f32 %v1948_v42, 0.0  ;;  %v2350_v45 = vpop.f32.mrb[2].mxu1 }
 0x3c4   : > { %1965 = vst.msk [vmem:[%s271_s10 + $0x8] sm:$0xff] %vm300_vm8, %v1957_v43  ;;  %v1951_v5 = vadd.f32 %v2350_v45, %v2123_v37  ;;  %v1904_v46 = vpop.f32.mrb[3].mxu1 }
 0x3c5   : > { %1964 = vst.msk [vmem:[%s271_s10] sm:$0xff] %vm300_vm8, %v1956_v44  ;;  %v1950_v47 = vadd.f32 %v2123_v37, %v1904_v46 }
 0x3c6   : > { %v1959_v49 = vmax.f32 %v1951_v5, 0.0 }
 0x3c7   : > { %v1958_v50 = vmax.f32 %v1950_v47, 0.0  ;;  %v2353_v51 = vpop.f32.mrb[4].mxu1 }
 0x3c8   : > { %1967 = vst.msk [vmem:[%s271_s10 + $0x18] sm:$0xff] %vm300_vm8, %v1959_v49  ;;  %v1953_v13 = vadd.f32 %v2353_v51, %v2123_v37  ;;  %v1914_v52 = vpop.f32.mrb[5].mxu1 }
 0x3c9   : > { %1966 = vst.msk [vmem:[%s271_s10 + $0x10] sm:$0xff] %vm300_vm8, %v1958_v50  ;;  %v1952_v21 = vadd.f32 %v2123_v37, %v1914_v52 }
 0x3ca   : > { %v1961_v53 = vmax.f32 %v1953_v13, 0.0 }
 0x3cb   : > { %v1960_v55 = vmax.f32 %v1952_v21, 0.0  ;;  %v2356_v54 = vpop.f32.mrb[6].mxu1 }
 0x3cc   : > { %1969 = vst.msk [vmem:[%s271_s10 + $0x28] sm:$0xff] %vm300_vm8, %v1961_v53  ;;  %v1955_v57 = vadd.f32 %v2356_v54, %v2123_v37  ;;  %v1924_v60 = vpop.f32.mrb[7].mxu1 }
 0x3cd   : > { %1968 = vst.msk [vmem:[%s271_s10 + $0x20] sm:$0xff] %vm300_vm8, %v1960_v55  ;;  %v1954_v58 = vadd.f32 %v2123_v37, %v1924_v60 }
 0x3ce   : > { %v1963_v56 = vmax.f32 %v1955_v57, 0.0 }
 0x3cf   : > { %v1962_v35 = vmax.f32 %v1954_v58, 0.0 }
 0x3d0   : > { %1971 = vst.msk [vmem:[%s271_s10 + $0x38] sm:$0xff] %vm300_vm8, %v1963_v56 }
 0x3d1   : > { %1970 = vst.msk [vmem:[%s271_s10 + $0x30] sm:$0xff] %vm300_vm8, %v1962_v35 }
 0x3d2 PF: > { %s16_s21 = sadd.s32 1, %s2468_s21  }
 0x3d3   : > { %p13_p4 = scmp.ge.s32.totalorder %s16_s21, 4  }
 0x3d5   :  { %15 = sbr.rel (!%p13_p4) target bundleno = 1 (0x1), region = 87 }

</bundles_post_ra>
